<compile_context>
chip_gen: v5e
topology: v5e:2x2
jax: 0.10.0
libtpu: 0.0.40
codegen_flags: <defaults>
</compile_context>

<pallas_src>
import jax
import jax.numpy as jnp
import numpy as np
from jax import lax
from jax.experimental import pallas as pl
from jax.experimental.pallas import tpu as pltpu

KSIZE = 5
PAD = (KSIZE - 1) // 2            # 2
STATS_W = 128                     # lane-dense width of the per-block stats output
VMEM_LIMIT = 32 * 1024 * 1024     # explicit scoped-VMEM limit (v5e default is 16 MiB)


def _make_conv_kernel(H, W, lpad):
    HW = H * W

    def kernel(w_ref, m_ref, x_ref, y_ref, stats_ref, pad0_ref, pad1_ref):
        """ZPool + 5x5 conv (2->1 ch, pad=2, no bias) for a block of images.

        w_ref    : SMEM (50,) f32        -- conv weight, flat [in_c, kh, kw]
        m_ref    : VMEM (25, HW) f32     -- 0/1 boundary mask per conv tap
        x_ref    : VMEM (B, C, HW)       -- input block, spatial dims flattened
        y_ref    : VMEM (B, 1, HW)       -- conv output (pre-BatchNorm)
        stats_ref: VMEM (1, 1, STATS_W)  -- per-block [sum, sum_sq, 0, ...]
        pad*_ref : VMEM (B, HW + 2*lpad) -- lane-padded pooled planes (scratch)
        """
        B = x_ref.shape[0]
        x = x_ref[...].astype(jnp.float32)                 # (B, C, HW)

        # ---- ZPool over the channel axis ----
        maxp = jnp.max(x, axis=1)                          # (B, HW)
        meanp = jnp.mean(x, axis=1)                        # (B, HW)

        # ---- lane-padded planes in VMEM scratch (no concatenate relayouts) ----
        pad0_ref[...] = jnp.zeros_like(pad0_ref)
        pad1_ref[...] = jnp.zeros_like(pad1_ref)
        pad0_ref[:, lpad:lpad + HW] = maxp
        pad1_ref[:, lpad:lpad + HW] = meanp

        # ---- 5x5 conv: one static lane-offset read + boundary mask per tap ----
        acc = jnp.zeros((B, HW), jnp.float32)
        for kh in range(KSIZE):
            for kw in range(KSIZE):
                t = kh * KSIZE + kw
                start = lpad + (kh - PAD) * W + (kw - PAD)
                m = m_ref[t:t + 1, :]                       # (1, HW) 0/1 mask
                s0 = pad0_ref[:, start:start + HW] * m      # shifted max-pool plane
                s1 = pad1_ref[:, start:start + HW] * m      # shifted mean-pool plane
                acc = acc + w_ref[t] * s0 + w_ref[KSIZE * KSIZE + t] * s1

        y_ref[...] = acc.reshape(B, 1, HW)

        # ---- BatchNorm partial statistics for this block (lane-dense store) ----
        s = jnp.sum(acc)
        ss = jnp.sum(acc * acc)
        lane = lax.broadcasted_iota(jnp.int32, (1, 1, STATS_W), 2)
        stats_ref[...] = jnp.where(lane == 0, s, jnp.where(lane == 1, ss, 0.0))

    return kernel


def _gate_kernel(bn_ref, y_ref, x_ref, out_ref):
    """out = x * (scale * y + shift) on lane-dense (B, C, HW) blocks.

    bn_ref : SMEM (2,) f32 -- [scale, shift] (folded train-mode BatchNorm affine)
    """
    gate = bn_ref[0] * y_ref[...] + bn_ref[1]               # (B, 1, HW) f32
    out_ref[...] = (x_ref[...].astype(jnp.float32) * gate).astype(out_ref.dtype)


def _choose_bblk(n, c, hw, itemsize=4, vmem_budget=8 * 1024 * 1024):
    """Largest per-step batch block that keeps >= 2 grid steps (v7x has 2 TCs)
    and keeps the 2x-buffered in+out blocks well inside the scoped VMEM limit."""
    best = 1
    for b in range(1, min(n, 8) + 1):
        if n % b != 0:
            continue
        if n >= 2 and n // b < 2:
            continue
        step_bytes = 2 * 2 * (b * c * hw + b * hw) * itemsize
        if step_bytes <= vmem_budget:
            best = b
    return best


def _tap_masks(H, W):
    """0/1 boundary mask per conv tap in the flattened (H*W,) lane layout."""
    o = np.arange(H * W)
    hh, ww = o // W, o % W
    masks = np.zeros((KSIZE * KSIZE, H * W), np.float32)
    for kh in range(KSIZE):
        for kw in range(KSIZE):
            dh, dw = kh - PAD, kw - PAD
            valid = ((hh + dh >= 0) & (hh + dh < H) &
                     (ww + dw >= 0) & (ww + dw < W))
            masks[kh * KSIZE + kw] = valid.astype(np.float32)
    return masks


def attention_gate2(x, conv_w, gamma, beta, eps=1e-5):
    """x: (N, C, H, W); conv_w: (1, 2, 5, 5) f32; gamma/beta: scalars."""
    N, C, H, W = x.shape
    HW = H * W
    lpad = PAD * W + PAD                    # max |lane shift| of any conv tap

    # Free (metadata-only) reshape so every block is lane-dense (last dim HW).
    x2 = x.reshape(N, C, HW)
    w_flat = conv_w.reshape(-1).astype(jnp.float32)          # (50,)
    masks = jnp.asarray(_tap_masks(H, W))                    # (25, HW)

    bblk = _choose_bblk(N, C, HW)
    n_blocks = N // bblk
    # TODO(synk): H/W halo tiling for very large spatial dims is not implemented;
    # blocks are whole images, so huge H*W would need spatial tiling (v7x first).

    cparams = pltpu.CompilerParams(
        dimension_semantics=("parallel",),
        vmem_limit_bytes=VMEM_LIMIT)

    # ---- pass 1: ZPool + conv + BN partial sums, bblk images per grid step ----
    y, stats = pl.pallas_call(
        _make_conv_kernel(H, W, lpad),
        out_shape=(
            jax.ShapeDtypeStruct((N, 1, HW), jnp.float32),
            jax.ShapeDtypeStruct((n_blocks, 1, STATS_W), jnp.float32),
        ),
        grid=(n_blocks,),
        in_specs=[
            pl.BlockSpec(memory_space=pltpu.MemorySpace.SMEM),       # conv weights
            pl.BlockSpec((KSIZE * KSIZE, HW), lambda n: (0, 0)),     # tap masks
            pl.BlockSpec((bblk, C, HW), lambda n: (n, 0, 0)),        # x block
        ],
        out_specs=(
            pl.BlockSpec((bblk, 1, HW), lambda n: (n, 0, 0)),        # y block
            pl.BlockSpec((1, 1, STATS_W), lambda n: (n, 0, 0)),      # partial sums
        ),
        scratch_shapes=[
            pltpu.VMEM((bblk, HW + 2 * lpad), jnp.float32),
            pltpu.VMEM((bblk, HW + 2 * lpad), jnp.float32),
        ],
        compiler_params=cparams,
    )(w_flat, masks, x2)

    # ---- global train-mode BatchNorm2d(1) statistics (eps=1e-5, biased var),
    #      folded into one (scale, shift) pair; variance clamped at zero ----
    cnt = float(N * HW)
    s_tot = jnp.sum(stats[:, 0, 0])
    ss_tot = jnp.sum(stats[:, 0, 1])
    mu = s_tot / cnt
    var = jnp.maximum(ss_tot / cnt - mu * mu, 0.0)
    scale = gamma * lax.rsqrt(var + eps)
    shift = beta - mu * scale
    bn = jnp.stack([scale, shift]).astype(jnp.float32)               # (2,)

    # ---- pass 2: gate apply on lane-dense (bblk, C, HW) blocks ----
    out = pl.pallas_call(
        _gate_kernel,
        out_shape=jax.ShapeDtypeStruct((N, C, HW), x.dtype),
        grid=(n_blocks,),
        in_specs=[
            pl.BlockSpec(memory_space=pltpu.MemorySpace.SMEM),       # [scale, shift]
            pl.BlockSpec((bblk, 1, HW), lambda n: (n, 0, 0)),        # y (pre-affine)
            pl.BlockSpec((bblk, C, HW), lambda n: (n, 0, 0)),        # x
        ],
        out_specs=pl.BlockSpec((bblk, C, HW), lambda n: (n, 0, 0)),
        compiler_params=cparams,
    )(bn, y, x2)

    return out.reshape(N, C, H, W)


def _reference(x, conv_w, gamma, beta, eps=1e-5):
    """Pure-JAX reference of the forward pass (train-mode BN)."""
    zmax = jnp.max(x, axis=1, keepdims=True)
    zmean = jnp.mean(x, axis=1, keepdims=True)
    z = jnp.concatenate([zmax, zmean], axis=1)                       # (N, 2, H, W)
    y = lax.conv_general_dilated(
        z, conv_w, window_strides=(1, 1), padding=((PAD, PAD), (PAD, PAD)),
        dimension_numbers=("NCHW", "OIHW", "NCHW"))                  # (N, 1, H, W)
    mu = jnp.mean(y)
    var = jnp.mean((y - mu) ** 2)
    gate = gamma * (y - mu) * lax.rsqrt(var + eps) + beta
    return x * gate


if __name__ == "__main__":
    key = jax.random.PRNGKey(0)
    kx, kw = jax.random.split(key)

    N, C, H, W = 2, 4, 16, 16
    x = jax.random.normal(kx, (N, C, H, W), dtype=jnp.float32)

    # Parameters of BasicConv1(2, 1, 5, padding=2, relu=False, bias=False).
    conv_w = 0.1 * jax.random.normal(kw, (1, 2, KSIZE, KSIZE), dtype=jnp.float32)
    gamma = 1.0   # BatchNorm2d default affine init
    beta = 0.0

    out = attention_gate2(x, conv_w, gamma, beta)
    out = jax.block_until_ready(out)

    ref = _reference(x, conv_w, gamma, beta)
    if not bool(jnp.allclose(out, ref, atol=1e-4, rtol=1e-4)):
        raise AssertionError("Pallas kernel output does not match JAX reference")

    print("KERNEL_OK")
</pallas_src>

<mosaic_0001>
module attributes {stable_mosaic.version = 11 : i64} {
  func.func @kernel(%arg0: i32, %arg1: memref<50xf32, #tpu.memory_space<smem>>, %arg2: memref<25x256xf32, #tpu.memory_space<vmem>>, %arg3: memref<1x4x256xf32, #tpu.memory_space<vmem>>, %arg4: memref<1x1x256xf32, #tpu.memory_space<vmem>>, %arg5: memref<1x1x128xf32, #tpu.memory_space<vmem>>, %arg6: memref<1x324xf32, #tpu.memory_space<vmem>>, %arg7: memref<1x324xf32, #tpu.memory_space<vmem>>) attributes {dimension_semantics = [#tpu.dimension_semantics<parallel>], iteration_bounds = array<i64: 2>, scalar_prefetch = 0 : i64, scratch_operands = 2 : i64, tpu.core_type = #tpu.core_type<tc>, window_params = [{transform_indices = @transform_0, window_bounds = array<i64: 50>}, {pipeline_mode = #tpu.pipeline_mode<synchronous>, transform_indices = @transform_1, window_bounds = array<i64: 25, 256>}, {transform_indices = @transform_2, window_bounds = array<i64: 1, 4, 256>}, {transform_indices = @transform_3, window_bounds = array<i64: 1, 1, 256>}, {transform_indices = @transform_4, window_bounds = array<i64: 1, 1, 128>}]} {
    %c0 = arith.constant 0 : index
    %c0_0 = arith.constant 0 : index
    %c0_1 = arith.constant 0 : index
    %0 = vector.load %arg3[%c0, %c0_0, %c0_1] : memref<1x4x256xf32, #tpu.memory_space<vmem>>, vector<1x4x256xf32>
    %cst = arith.constant dense<0xFF800000> : vector<1x256xf32>
    %1 = vector.multi_reduction <maximumf>, %0, %cst [1] : vector<1x4x256xf32> to vector<1x256xf32>
    %cst_2 = arith.constant dense<0.000000e+00> : vector<1x256xf32>
    %2 = vector.multi_reduction <add>, %0, %cst_2 [1] : vector<1x4x256xf32> to vector<1x256xf32>
    %cst_3 = arith.constant 4.000000e+00 : f32
    %3 = vector.broadcast %cst_3 : f32 to vector<1x256xf32>
    %4 = arith.divf %2, %3 : vector<1x256xf32>
    %cst_4 = arith.constant 0.000000e+00 : f32
    %5 = vector.broadcast %cst_4 : f32 to vector<1x324xf32>
    %c0_5 = arith.constant 0 : index
    %c0_6 = arith.constant 0 : index
    %6 = vector.load %arg6[%c0_5, %c0_6] : memref<1x324xf32, #tpu.memory_space<vmem>>, vector<1x324xf32>
    tpu.vector_store %arg6[%c0_5, %c0_6], %5 {strides = array<i32>} : memref<1x324xf32, #tpu.memory_space<vmem>>, vector<1x324xf32>,
    %cst_7 = arith.constant 0.000000e+00 : f32
    %7 = vector.broadcast %cst_7 : f32 to vector<1x324xf32>
    %c0_8 = arith.constant 0 : index
    %c0_9 = arith.constant 0 : index
    %8 = vector.load %arg7[%c0_8, %c0_9] : memref<1x324xf32, #tpu.memory_space<vmem>>, vector<1x324xf32>
    tpu.vector_store %arg7[%c0_8, %c0_9], %7 {strides = array<i32>} : memref<1x324xf32, #tpu.memory_space<vmem>>, vector<1x324xf32>,
    %c0_10 = arith.constant 0 : index
    %c34 = arith.constant 34 : index
    %9 = vector.load %arg6[%c0_10, %c34] : memref<1x324xf32, #tpu.memory_space<vmem>>, vector<1x256xf32>
    tpu.vector_store %arg6[%c0_10, %c34], %1 {strides = array<i32>} : memref<1x324xf32, #tpu.memory_space<vmem>>, vector<1x256xf32>,
    %c0_11 = arith.constant 0 : index
    %c34_12 = arith.constant 34 : index
    %10 = vector.load %arg7[%c0_11, %c34_12] : memref<1x324xf32, #tpu.memory_space<vmem>>, vector<1x256xf32>
    tpu.vector_store %arg7[%c0_11, %c34_12], %4 {strides = array<i32>} : memref<1x324xf32, #tpu.memory_space<vmem>>, vector<1x256xf32>,
    %cst_13 = arith.constant 0.000000e+00 : f32
    %11 = vector.broadcast %cst_13 : f32 to vector<1x256xf32>
    %c0_14 = arith.constant 0 : index
    %c0_15 = arith.constant 0 : index
    %12 = vector.load %arg2[%c0_14, %c0_15] : memref<25x256xf32, #tpu.memory_space<vmem>>, vector<1x256xf32>
    %c0_16 = arith.constant 0 : index
    %c0_17 = arith.constant 0 : index
    %13 = vector.load %arg6[%c0_16, %c0_17] : memref<1x324xf32, #tpu.memory_space<vmem>>, vector<1x256xf32>
    %14 = arith.mulf %13, %12 : vector<1x256xf32>
    %c0_18 = arith.constant 0 : index
    %c0_19 = arith.constant 0 : index
    %15 = vector.load %arg7[%c0_18, %c0_19] : memref<1x324xf32, #tpu.memory_space<vmem>>, vector<1x256xf32>
    %16 = arith.mulf %15, %12 : vector<1x256xf32>
    %c0_20 = arith.constant 0 : index
    %17 = memref.load %arg1[%c0_20] : memref<50xf32, #tpu.memory_space<smem>>
    %18 = vector.broadcast %17 : f32 to vector<1x256xf32>
    %19 = arith.mulf %18, %14 : vector<1x256xf32>
    %20 = arith.addf %11, %19 : vector<1x256xf32>
    %c25 = arith.constant 25 : index
    %21 = memref.load %arg1[%c25] : memref<50xf32, #tpu.memory_space<smem>>
    %22 = vector.broadcast %21 : f32 to vector<1x256xf32>
    %23 = arith.mulf %22, %16 : vector<1x256xf32>
    %24 = arith.addf %20, %23 : vector<1x256xf32>
    %c1 = arith.constant 1 : index
    %c0_21 = arith.constant 0 : index
    %25 = vector.load %arg2[%c1, %c0_21] : memref<25x256xf32, #tpu.memory_space<vmem>>, vector<1x256xf32>
    %c0_22 = arith.constant 0 : index
    %c1_23 = arith.constant 1 : index
    %26 = vector.load %arg6[%c0_22, %c1_23] : memref<1x324xf32, #tpu.memory_space<vmem>>, vector<1x256xf32>
    %27 = arith.mulf %26, %25 : vector<1x256xf32>
    %c0_24 = arith.constant 0 : index
    %c1_25 = arith.constant 1 : index
    %28 = vector.load %arg7[%c0_24, %c1_25] : memref<1x324xf32, #tpu.memory_space<vmem>>, vector<1x256xf32>
    %29 = arith.mulf %28, %25 : vector<1x256xf32>
    %c1_26 = arith.constant 1 : index
    %30 = memref.load %arg1[%c1_26] : memref<50xf32, #tpu.memory_space<smem>>
    %31 = vector.broadcast %30 : f32 to vector<1x256xf32>
    %32 = arith.mulf %31, %27 : vector<1x256xf32>
    %33 = arith.addf %24, %32 : vector<1x256xf32>
    %c26 = arith.constant 26 : index
    %34 = memref.load %arg1[%c26] : memref<50xf32, #tpu.memory_space<smem>>
    %35 = vector.broadcast %34 : f32 to vector<1x256xf32>
    %36 = arith.mulf %35, %29 : vector<1x256xf32>
    %37 = arith.addf %33, %36 : vector<1x256xf32>
    %c2 = arith.constant 2 : index
    %c0_27 = arith.constant 0 : index
    %38 = vector.load %arg2[%c2, %c0_27] : memref<25x256xf32, #tpu.memory_space<vmem>>, vector<1x256xf32>
    %c0_28 = arith.constant 0 : index
    %c2_29 = arith.constant 2 : index
    %39 = vector.load %arg6[%c0_28, %c2_29] : memref<1x324xf32, #tpu.memory_space<vmem>>, vector<1x256xf32>
    %40 = arith.mulf %39, %38 : vector<1x256xf32>
    %c0_30 = arith.constant 0 : index
    %c2_31 = arith.constant 2 : index
    %41 = vector.load %arg7[%c0_30, %c2_31] : memref<1x324xf32, #tpu.memory_space<vmem>>, vector<1x256xf32>
    %42 = arith.mulf %41, %38 : vector<1x256xf32>
    %c2_32 = arith.constant 2 : index
    %43 = memref.load %arg1[%c2_32] : memref<50xf32, #tpu.memory_space<smem>>
    %44 = vector.broadcast %43 : f32 to vector<1x256xf32>
    %45 = arith.mulf %44, %40 : vector<1x256xf32>
    %46 = arith.addf %37, %45 : vector<1x256xf32>
    %c27 = arith.constant 27 : index
    %47 = memref.load %arg1[%c27] : memref<50xf32, #tpu.memory_space<smem>>
    %48 = vector.broadcast %47 : f32 to vector<1x256xf32>
    %49 = arith.mulf %48, %42 : vector<1x256xf32>
    %50 = arith.addf %46, %49 : vector<1x256xf32>
    %c3 = arith.constant 3 : index
    %c0_33 = arith.constant 0 : index
    %51 = vector.load %arg2[%c3, %c0_33] : memref<25x256xf32, #tpu.memory_space<vmem>>, vector<1x256xf32>
    %c0_34 = arith.constant 0 : index
    %c3_35 = arith.constant 3 : index
    %52 = vector.load %arg6[%c0_34, %c3_35] : memref<1x324xf32, #tpu.memory_space<vmem>>, vector<1x256xf32>
    %53 = arith.mulf %52, %51 : vector<1x256xf32>
    %c0_36 = arith.constant 0 : index
    %c3_37 = arith.constant 3 : index
    %54 = vector.load %arg7[%c0_36, %c3_37] : memref<1x324xf32, #tpu.memory_space<vmem>>, vector<1x256xf32>
    %55 = arith.mulf %54, %51 : vector<1x256xf32>
    %c3_38 = arith.constant 3 : index
    %56 = memref.load %arg1[%c3_38] : memref<50xf32, #tpu.memory_space<smem>>
    %57 = vector.broadcast %56 : f32 to vector<1x256xf32>
    %58 = arith.mulf %57, %53 : vector<1x256xf32>
    %59 = arith.addf %50, %58 : vector<1x256xf32>
    %c28 = arith.constant 28 : index
    %60 = memref.load %arg1[%c28] : memref<50xf32, #tpu.memory_space<smem>>
    %61 = vector.broadcast %60 : f32 to vector<1x256xf32>
    %62 = arith.mulf %61, %55 : vector<1x256xf32>
    %63 = arith.addf %59, %62 : vector<1x256xf32>
    %c4 = arith.constant 4 : index
    %c0_39 = arith.constant 0 : index
    %64 = vector.load %arg2[%c4, %c0_39] : memref<25x256xf32, #tpu.memory_space<vmem>>, vector<1x256xf32>
    %c0_40 = arith.constant 0 : index
    %c4_41 = arith.constant 4 : index
    %65 = vector.load %arg6[%c0_40, %c4_41] : memref<1x324xf32, #tpu.memory_space<vmem>>, vector<1x256xf32>
    %66 = arith.mulf %65, %64 : vector<1x256xf32>
    %c0_42 = arith.constant 0 : index
    %c4_43 = arith.constant 4 : index
    %67 = vector.load %arg7[%c0_42, %c4_43] : memref<1x324xf32, #tpu.memory_space<vmem>>, vector<1x256xf32>
    %68 = arith.mulf %67, %64 : vector<1x256xf32>
    %c4_44 = arith.constant 4 : index
    %69 = memref.load %arg1[%c4_44] : memref<50xf32, #tpu.memory_space<smem>>
    %70 = vector.broadcast %69 : f32 to vector<1x256xf32>
    %71 = arith.mulf %70, %66 : vector<1x256xf32>
    %72 = arith.addf %63, %71 : vector<1x256xf32>
    %c29 = arith.constant 29 : index
    %73 = memref.load %arg1[%c29] : memref<50xf32, #tpu.memory_space<smem>>
    %74 = vector.broadcast %73 : f32 to vector<1x256xf32>
    %75 = arith.mulf %74, %68 : vector<1x256xf32>
    %76 = arith.addf %72, %75 : vector<1x256xf32>
    %c5 = arith.constant 5 : index
    %c0_45 = arith.constant 0 : index
    %77 = vector.load %arg2[%c5, %c0_45] : memref<25x256xf32, #tpu.memory_space<vmem>>, vector<1x256xf32>
    %c0_46 = arith.constant 0 : index
    %c16 = arith.constant 16 : index
    %78 = vector.load %arg6[%c0_46, %c16] : memref<1x324xf32, #tpu.memory_space<vmem>>, vector<1x256xf32>
    %79 = arith.mulf %78, %77 : vector<1x256xf32>
    %c0_47 = arith.constant 0 : index
    %c16_48 = arith.constant 16 : index
    %80 = vector.load %arg7[%c0_47, %c16_48] : memref<1x324xf32, #tpu.memory_space<vmem>>, vector<1x256xf32>
    %81 = arith.mulf %80, %77 : vector<1x256xf32>
    %c5_49 = arith.constant 5 : index
    %82 = memref.load %arg1[%c5_49] : memref<50xf32, #tpu.memory_space<smem>>
    %83 = vector.broadcast %82 : f32 to vector<1x256xf32>
    %84 = arith.mulf %83, %79 : vector<1x256xf32>
    %85 = arith.addf %76, %84 : vector<1x256xf32>
    %c30 = arith.constant 30 : index
    %86 = memref.load %arg1[%c30] : memref<50xf32, #tpu.memory_space<smem>>
    %87 = vector.broadcast %86 : f32 to vector<1x256xf32>
    %88 = arith.mulf %87, %81 : vector<1x256xf32>
    %89 = arith.addf %85, %88 : vector<1x256xf32>
    %c6 = arith.constant 6 : index
    %c0_50 = arith.constant 0 : index
    %90 = vector.load %arg2[%c6, %c0_50] : memref<25x256xf32, #tpu.memory_space<vmem>>, vector<1x256xf32>
    %c0_51 = arith.constant 0 : index
    %c17 = arith.constant 17 : index
    %91 = vector.load %arg6[%c0_51, %c17] : memref<1x324xf32, #tpu.memory_space<vmem>>, vector<1x256xf32>
    %92 = arith.mulf %91, %90 : vector<1x256xf32>
    %c0_52 = arith.constant 0 : index
    %c17_53 = arith.constant 17 : index
    %93 = vector.load %arg7[%c0_52, %c17_53] : memref<1x324xf32, #tpu.memory_space<vmem>>, vector<1x256xf32>
    %94 = arith.mulf %93, %90 : vector<1x256xf32>
    %c6_54 = arith.constant 6 : index
    %95 = memref.load %arg1[%c6_54] : memref<50xf32, #tpu.memory_space<smem>>
    %96 = vector.broadcast %95 : f32 to vector<1x256xf32>
    %97 = arith.mulf %96, %92 : vector<1x256xf32>
    %98 = arith.addf %89, %97 : vector<1x256xf32>
    %c31 = arith.constant 31 : index
    %99 = memref.load %arg1[%c31] : memref<50xf32, #tpu.memory_space<smem>>
    %100 = vector.broadcast %99 : f32 to vector<1x256xf32>
    %101 = arith.mulf %100, %94 : vector<1x256xf32>
    %102 = arith.addf %98, %101 : vector<1x256xf32>
    %c7 = arith.constant 7 : index
    %c0_55 = arith.constant 0 : index
    %103 = vector.load %arg2[%c7, %c0_55] : memref<25x256xf32, #tpu.memory_space<vmem>>, vector<1x256xf32>
    %c0_56 = arith.constant 0 : index
    %c18 = arith.constant 18 : index
    %104 = vector.load %arg6[%c0_56, %c18] : memref<1x324xf32, #tpu.memory_space<vmem>>, vector<1x256xf32>
    %105 = arith.mulf %104, %103 : vector<1x256xf32>
    %c0_57 = arith.constant 0 : index
    %c18_58 = arith.constant 18 : index
    %106 = vector.load %arg7[%c0_57, %c18_58] : memref<1x324xf32, #tpu.memory_space<vmem>>, vector<1x256xf32>
    %107 = arith.mulf %106, %103 : vector<1x256xf32>
    %c7_59 = arith.constant 7 : index
    %108 = memref.load %arg1[%c7_59] : memref<50xf32, #tpu.memory_space<smem>>
    %109 = vector.broadcast %108 : f32 to vector<1x256xf32>
    %110 = arith.mulf %109, %105 : vector<1x256xf32>
    %111 = arith.addf %102, %110 : vector<1x256xf32>
    %c32 = arith.constant 32 : index
    %112 = memref.load %arg1[%c32] : memref<50xf32, #tpu.memory_space<smem>>
    %113 = vector.broadcast %112 : f32 to vector<1x256xf32>
    %114 = arith.mulf %113, %107 : vector<1x256xf32>
    %115 = arith.addf %111, %114 : vector<1x256xf32>
    %c8 = arith.constant 8 : index
    %c0_60 = arith.constant 0 : index
    %116 = vector.load %arg2[%c8, %c0_60] : memref<25x256xf32, #tpu.memory_space<vmem>>, vector<1x256xf32>
    %c0_61 = arith.constant 0 : index
    %c19 = arith.constant 19 : index
    %117 = vector.load %arg6[%c0_61, %c19] : memref<1x324xf32, #tpu.memory_space<vmem>>, vector<1x256xf32>
    %118 = arith.mulf %117, %116 : vector<1x256xf32>
    %c0_62 = arith.constant 0 : index
    %c19_63 = arith.constant 19 : index
    %119 = vector.load %arg7[%c0_62, %c19_63] : memref<1x324xf32, #tpu.memory_space<vmem>>, vector<1x256xf32>
    %120 = arith.mulf %119, %116 : vector<1x256xf32>
    %c8_64 = arith.constant 8 : index
    %121 = memref.load %arg1[%c8_64] : memref<50xf32, #tpu.memory_space<smem>>
    %122 = vector.broadcast %121 : f32 to vector<1x256xf32>
    %123 = arith.mulf %122, %118 : vector<1x256xf32>
    %124 = arith.addf %115, %123 : vector<1x256xf32>
    %c33 = arith.constant 33 : index
    %125 = memref.load %arg1[%c33] : memref<50xf32, #tpu.memory_space<smem>>
    %126 = vector.broadcast %125 : f32 to vector<1x256xf32>
    %127 = arith.mulf %126, %120 : vector<1x256xf32>
    %128 = arith.addf %124, %127 : vector<1x256xf32>
    %c9 = arith.constant 9 : index
    %c0_65 = arith.constant 0 : index
    %129 = vector.load %arg2[%c9, %c0_65] : memref<25x256xf32, #tpu.memory_space<vmem>>, vector<1x256xf32>
    %c0_66 = arith.constant 0 : index
    %c20 = arith.constant 20 : index
    %130 = vector.load %arg6[%c0_66, %c20] : memref<1x324xf32, #tpu.memory_space<vmem>>, vector<1x256xf32>
    %131 = arith.mulf %130, %129 : vector<1x256xf32>
    %c0_67 = arith.constant 0 : index
    %c20_68 = arith.constant 20 : index
    %132 = vector.load %arg7[%c0_67, %c20_68] : memref<1x324xf32, #tpu.memory_space<vmem>>, vector<1x256xf32>
    %133 = arith.mulf %132, %129 : vector<1x256xf32>
    %c9_69 = arith.constant 9 : index
    %134 = memref.load %arg1[%c9_69] : memref<50xf32, #tpu.memory_space<smem>>
    %135 = vector.broadcast %134 : f32 to vector<1x256xf32>
    %136 = arith.mulf %135, %131 : vector<1x256xf32>
    %137 = arith.addf %128, %136 : vector<1x256xf32>
    %c34_70 = arith.constant 34 : index
    %138 = memref.load %arg1[%c34_70] : memref<50xf32, #tpu.memory_space<smem>>
    %139 = vector.broadcast %138 : f32 to vector<1x256xf32>
    %140 = arith.mulf %139, %133 : vector<1x256xf32>
    %141 = arith.addf %137, %140 : vector<1x256xf32>
    %c10 = arith.constant 10 : index
    %c0_71 = arith.constant 0 : index
    %142 = vector.load %arg2[%c10, %c0_71] : memref<25x256xf32, #tpu.memory_space<vmem>>, vector<1x256xf32>
    %c0_72 = arith.constant 0 : index
    %c32_73 = arith.constant 32 : index
    %143 = vector.load %arg6[%c0_72, %c32_73] : memref<1x324xf32, #tpu.memory_space<vmem>>, vector<1x256xf32>
    %144 = arith.mulf %143, %142 : vector<1x256xf32>
    %c0_74 = arith.constant 0 : index
    %c32_75 = arith.constant 32 : index
    %145 = vector.load %arg7[%c0_74, %c32_75] : memref<1x324xf32, #tpu.memory_space<vmem>>, vector<1x256xf32>
    %146 = arith.mulf %145, %142 : vector<1x256xf32>
    %c10_76 = arith.constant 10 : index
    %147 = memref.load %arg1[%c10_76] : memref<50xf32, #tpu.memory_space<smem>>
    %148 = vector.broadcast %147 : f32 to vector<1x256xf32>
    %149 = arith.mulf %148, %144 : vector<1x256xf32>
    %150 = arith.addf %141, %149 : vector<1x256xf32>
    %c35 = arith.constant 35 : index
    %151 = memref.load %arg1[%c35] : memref<50xf32, #tpu.memory_space<smem>>
    %152 = vector.broadcast %151 : f32 to vector<1x256xf32>
    %153 = arith.mulf %152, %146 : vector<1x256xf32>
    %154 = arith.addf %150, %153 : vector<1x256xf32>
    %c11 = arith.constant 11 : index
    %c0_77 = arith.constant 0 : index
    %155 = vector.load %arg2[%c11, %c0_77] : memref<25x256xf32, #tpu.memory_space<vmem>>, vector<1x256xf32>
    %c0_78 = arith.constant 0 : index
    %c33_79 = arith.constant 33 : index
    %156 = vector.load %arg6[%c0_78, %c33_79] : memref<1x324xf32, #tpu.memory_space<vmem>>, vector<1x256xf32>
    %157 = arith.mulf %156, %155 : vector<1x256xf32>
    %c0_80 = arith.constant 0 : index
    %c33_81 = arith.constant 33 : index
    %158 = vector.load %arg7[%c0_80, %c33_81] : memref<1x324xf32, #tpu.memory_space<vmem>>, vector<1x256xf32>
    %159 = arith.mulf %158, %155 : vector<1x256xf32>
    %c11_82 = arith.constant 11 : index
    %160 = memref.load %arg1[%c11_82] : memref<50xf32, #tpu.memory_space<smem>>
    %161 = vector.broadcast %160 : f32 to vector<1x256xf32>
    %162 = arith.mulf %161, %157 : vector<1x256xf32>
    %163 = arith.addf %154, %162 : vector<1x256xf32>
    %c36 = arith.constant 36 : index
    %164 = memref.load %arg1[%c36] : memref<50xf32, #tpu.memory_space<smem>>
    %165 = vector.broadcast %164 : f32 to vector<1x256xf32>
    %166 = arith.mulf %165, %159 : vector<1x256xf32>
    %167 = arith.addf %163, %166 : vector<1x256xf32>
    %c12 = arith.constant 12 : index
    %c0_83 = arith.constant 0 : index
    %168 = vector.load %arg2[%c12, %c0_83] : memref<25x256xf32, #tpu.memory_space<vmem>>, vector<1x256xf32>
    %c0_84 = arith.constant 0 : index
    %c34_85 = arith.constant 34 : index
    %169 = vector.load %arg6[%c0_84, %c34_85] : memref<1x324xf32, #tpu.memory_space<vmem>>, vector<1x256xf32>
    %170 = arith.mulf %169, %168 : vector<1x256xf32>
    %c0_86 = arith.constant 0 : index
    %c34_87 = arith.constant 34 : index
    %171 = vector.load %arg7[%c0_86, %c34_87] : memref<1x324xf32, #tpu.memory_space<vmem>>, vector<1x256xf32>
    %172 = arith.mulf %171, %168 : vector<1x256xf32>
    %c12_88 = arith.constant 12 : index
    %173 = memref.load %arg1[%c12_88] : memref<50xf32, #tpu.memory_space<smem>>
    %174 = vector.broadcast %173 : f32 to vector<1x256xf32>
    %175 = arith.mulf %174, %170 : vector<1x256xf32>
    %176 = arith.addf %167, %175 : vector<1x256xf32>
    %c37 = arith.constant 37 : index
    %177 = memref.load %arg1[%c37] : memref<50xf32, #tpu.memory_space<smem>>
    %178 = vector.broadcast %177 : f32 to vector<1x256xf32>
    %179 = arith.mulf %178, %172 : vector<1x256xf32>
    %180 = arith.addf %176, %179 : vector<1x256xf32>
    %c13 = arith.constant 13 : index
    %c0_89 = arith.constant 0 : index
    %181 = vector.load %arg2[%c13, %c0_89] : memref<25x256xf32, #tpu.memory_space<vmem>>, vector<1x256xf32>
    %c0_90 = arith.constant 0 : index
    %c35_91 = arith.constant 35 : index
    %182 = vector.load %arg6[%c0_90, %c35_91] : memref<1x324xf32, #tpu.memory_space<vmem>>, vector<1x256xf32>
    %183 = arith.mulf %182, %181 : vector<1x256xf32>
    %c0_92 = arith.constant 0 : index
    %c35_93 = arith.constant 35 : index
    %184 = vector.load %arg7[%c0_92, %c35_93] : memref<1x324xf32, #tpu.memory_space<vmem>>, vector<1x256xf32>
    %185 = arith.mulf %184, %181 : vector<1x256xf32>
    %c13_94 = arith.constant 13 : index
    %186 = memref.load %arg1[%c13_94] : memref<50xf32, #tpu.memory_space<smem>>
    %187 = vector.broadcast %186 : f32 to vector<1x256xf32>
    %188 = arith.mulf %187, %183 : vector<1x256xf32>
    %189 = arith.addf %180, %188 : vector<1x256xf32>
    %c38 = arith.constant 38 : index
    %190 = memref.load %arg1[%c38] : memref<50xf32, #tpu.memory_space<smem>>
    %191 = vector.broadcast %190 : f32 to vector<1x256xf32>
    %192 = arith.mulf %191, %185 : vector<1x256xf32>
    %193 = arith.addf %189, %192 : vector<1x256xf32>
    %c14 = arith.constant 14 : index
    %c0_95 = arith.constant 0 : index
    %194 = vector.load %arg2[%c14, %c0_95] : memref<25x256xf32, #tpu.memory_space<vmem>>, vector<1x256xf32>
    %c0_96 = arith.constant 0 : index
    %c36_97 = arith.constant 36 : index
    %195 = vector.load %arg6[%c0_96, %c36_97] : memref<1x324xf32, #tpu.memory_space<vmem>>, vector<1x256xf32>
    %196 = arith.mulf %195, %194 : vector<1x256xf32>
    %c0_98 = arith.constant 0 : index
    %c36_99 = arith.constant 36 : index
    %197 = vector.load %arg7[%c0_98, %c36_99] : memref<1x324xf32, #tpu.memory_space<vmem>>, vector<1x256xf32>
    %198 = arith.mulf %197, %194 : vector<1x256xf32>
    %c14_100 = arith.constant 14 : index
    %199 = memref.load %arg1[%c14_100] : memref<50xf32, #tpu.memory_space<smem>>
    %200 = vector.broadcast %199 : f32 to vector<1x256xf32>
    %201 = arith.mulf %200, %196 : vector<1x256xf32>
    %202 = arith.addf %193, %201 : vector<1x256xf32>
    %c39 = arith.constant 39 : index
    %203 = memref.load %arg1[%c39] : memref<50xf32, #tpu.memory_space<smem>>
    %204 = vector.broadcast %203 : f32 to vector<1x256xf32>
    %205 = arith.mulf %204, %198 : vector<1x256xf32>
    %206 = arith.addf %202, %205 : vector<1x256xf32>
    %c15 = arith.constant 15 : index
    %c0_101 = arith.constant 0 : index
    %207 = vector.load %arg2[%c15, %c0_101] : memref<25x256xf32, #tpu.memory_space<vmem>>, vector<1x256xf32>
    %c0_102 = arith.constant 0 : index
    %c48 = arith.constant 48 : index
    %208 = vector.load %arg6[%c0_102, %c48] : memref<1x324xf32, #tpu.memory_space<vmem>>, vector<1x256xf32>
    %209 = arith.mulf %208, %207 : vector<1x256xf32>
    %c0_103 = arith.constant 0 : index
    %c48_104 = arith.constant 48 : index
    %210 = vector.load %arg7[%c0_103, %c48_104] : memref<1x324xf32, #tpu.memory_space<vmem>>, vector<1x256xf32>
    %211 = arith.mulf %210, %207 : vector<1x256xf32>
    %c15_105 = arith.constant 15 : index
    %212 = memref.load %arg1[%c15_105] : memref<50xf32, #tpu.memory_space<smem>>
    %213 = vector.broadcast %212 : f32 to vector<1x256xf32>
    %214 = arith.mulf %213, %209 : vector<1x256xf32>
    %215 = arith.addf %206, %214 : vector<1x256xf32>
    %c40 = arith.constant 40 : index
    %216 = memref.load %arg1[%c40] : memref<50xf32, #tpu.memory_space<smem>>
    %217 = vector.broadcast %216 : f32 to vector<1x256xf32>
    %218 = arith.mulf %217, %211 : vector<1x256xf32>
    %219 = arith.addf %215, %218 : vector<1x256xf32>
    %c16_106 = arith.constant 16 : index
    %c0_107 = arith.constant 0 : index
    %220 = vector.load %arg2[%c16_106, %c0_107] : memref<25x256xf32, #tpu.memory_space<vmem>>, vector<1x256xf32>
    %c0_108 = arith.constant 0 : index
    %c49 = arith.constant 49 : index
    %221 = vector.load %arg6[%c0_108, %c49] : memref<1x324xf32, #tpu.memory_space<vmem>>, vector<1x256xf32>
    %222 = arith.mulf %221, %220 : vector<1x256xf32>
    %c0_109 = arith.constant 0 : index
    %c49_110 = arith.constant 49 : index
    %223 = vector.load %arg7[%c0_109, %c49_110] : memref<1x324xf32, #tpu.memory_space<vmem>>, vector<1x256xf32>
    %224 = arith.mulf %223, %220 : vector<1x256xf32>
    %c16_111 = arith.constant 16 : index
    %225 = memref.load %arg1[%c16_111] : memref<50xf32, #tpu.memory_space<smem>>
    %226 = vector.broadcast %225 : f32 to vector<1x256xf32>
    %227 = arith.mulf %226, %222 : vector<1x256xf32>
    %228 = arith.addf %219, %227 : vector<1x256xf32>
    %c41 = arith.constant 41 : index
    %229 = memref.load %arg1[%c41] : memref<50xf32, #tpu.memory_space<smem>>
    %230 = vector.broadcast %229 : f32 to vector<1x256xf32>
    %231 = arith.mulf %230, %224 : vector<1x256xf32>
    %232 = arith.addf %228, %231 : vector<1x256xf32>
    %c17_112 = arith.constant 17 : index
    %c0_113 = arith.constant 0 : index
    %233 = vector.load %arg2[%c17_112, %c0_113] : memref<25x256xf32, #tpu.memory_space<vmem>>, vector<1x256xf32>
    %c0_114 = arith.constant 0 : index
    %c50 = arith.constant 50 : index
    %234 = vector.load %arg6[%c0_114, %c50] : memref<1x324xf32, #tpu.memory_space<vmem>>, vector<1x256xf32>
    %235 = arith.mulf %234, %233 : vector<1x256xf32>
    %c0_115 = arith.constant 0 : index
    %c50_116 = arith.constant 50 : index
    %236 = vector.load %arg7[%c0_115, %c50_116] : memref<1x324xf32, #tpu.memory_space<vmem>>, vector<1x256xf32>
    %237 = arith.mulf %236, %233 : vector<1x256xf32>
    %c17_117 = arith.constant 17 : index
    %238 = memref.load %arg1[%c17_117] : memref<50xf32, #tpu.memory_space<smem>>
    %239 = vector.broadcast %238 : f32 to vector<1x256xf32>
    %240 = arith.mulf %239, %235 : vector<1x256xf32>
    %241 = arith.addf %232, %240 : vector<1x256xf32>
    %c42 = arith.constant 42 : index
    %242 = memref.load %arg1[%c42] : memref<50xf32, #tpu.memory_space<smem>>
    %243 = vector.broadcast %242 : f32 to vector<1x256xf32>
    %244 = arith.mulf %243, %237 : vector<1x256xf32>
    %245 = arith.addf %241, %244 : vector<1x256xf32>
    %c18_118 = arith.constant 18 : index
    %c0_119 = arith.constant 0 : index
    %246 = vector.load %arg2[%c18_118, %c0_119] : memref<25x256xf32, #tpu.memory_space<vmem>>, vector<1x256xf32>
    %c0_120 = arith.constant 0 : index
    %c51 = arith.constant 51 : index
    %247 = vector.load %arg6[%c0_120, %c51] : memref<1x324xf32, #tpu.memory_space<vmem>>, vector<1x256xf32>
    %248 = arith.mulf %247, %246 : vector<1x256xf32>
    %c0_121 = arith.constant 0 : index
    %c51_122 = arith.constant 51 : index
    %249 = vector.load %arg7[%c0_121, %c51_122] : memref<1x324xf32, #tpu.memory_space<vmem>>, vector<1x256xf32>
    %250 = arith.mulf %249, %246 : vector<1x256xf32>
    %c18_123 = arith.constant 18 : index
    %251 = memref.load %arg1[%c18_123] : memref<50xf32, #tpu.memory_space<smem>>
    %252 = vector.broadcast %251 : f32 to vector<1x256xf32>
    %253 = arith.mulf %252, %248 : vector<1x256xf32>
    %254 = arith.addf %245, %253 : vector<1x256xf32>
    %c43 = arith.constant 43 : index
    %255 = memref.load %arg1[%c43] : memref<50xf32, #tpu.memory_space<smem>>
    %256 = vector.broadcast %255 : f32 to vector<1x256xf32>
    %257 = arith.mulf %256, %250 : vector<1x256xf32>
    %258 = arith.addf %254, %257 : vector<1x256xf32>
    %c19_124 = arith.constant 19 : index
    %c0_125 = arith.constant 0 : index
    %259 = vector.load %arg2[%c19_124, %c0_125] : memref<25x256xf32, #tpu.memory_space<vmem>>, vector<1x256xf32>
    %c0_126 = arith.constant 0 : index
    %c52 = arith.constant 52 : index
    %260 = vector.load %arg6[%c0_126, %c52] : memref<1x324xf32, #tpu.memory_space<vmem>>, vector<1x256xf32>
    %261 = arith.mulf %260, %259 : vector<1x256xf32>
    %c0_127 = arith.constant 0 : index
    %c52_128 = arith.constant 52 : index
    %262 = vector.load %arg7[%c0_127, %c52_128] : memref<1x324xf32, #tpu.memory_space<vmem>>, vector<1x256xf32>
    %263 = arith.mulf %262, %259 : vector<1x256xf32>
    %c19_129 = arith.constant 19 : index
    %264 = memref.load %arg1[%c19_129] : memref<50xf32, #tpu.memory_space<smem>>
    %265 = vector.broadcast %264 : f32 to vector<1x256xf32>
    %266 = arith.mulf %265, %261 : vector<1x256xf32>
    %267 = arith.addf %258, %266 : vector<1x256xf32>
    %c44 = arith.constant 44 : index
    %268 = memref.load %arg1[%c44] : memref<50xf32, #tpu.memory_space<smem>>
    %269 = vector.broadcast %268 : f32 to vector<1x256xf32>
    %270 = arith.mulf %269, %263 : vector<1x256xf32>
    %271 = arith.addf %267, %270 : vector<1x256xf32>
    %c20_130 = arith.constant 20 : index
    %c0_131 = arith.constant 0 : index
    %272 = vector.load %arg2[%c20_130, %c0_131] : memref<25x256xf32, #tpu.memory_space<vmem>>, vector<1x256xf32>
    %c0_132 = arith.constant 0 : index
    %c64 = arith.constant 64 : index
    %273 = vector.load %arg6[%c0_132, %c64] : memref<1x324xf32, #tpu.memory_space<vmem>>, vector<1x256xf32>
    %274 = arith.mulf %273, %272 : vector<1x256xf32>
    %c0_133 = arith.constant 0 : index
    %c64_134 = arith.constant 64 : index
    %275 = vector.load %arg7[%c0_133, %c64_134] : memref<1x324xf32, #tpu.memory_space<vmem>>, vector<1x256xf32>
    %276 = arith.mulf %275, %272 : vector<1x256xf32>
    %c20_135 = arith.constant 20 : index
    %277 = memref.load %arg1[%c20_135] : memref<50xf32, #tpu.memory_space<smem>>
    %278 = vector.broadcast %277 : f32 to vector<1x256xf32>
    %279 = arith.mulf %278, %274 : vector<1x256xf32>
    %280 = arith.addf %271, %279 : vector<1x256xf32>
    %c45 = arith.constant 45 : index
    %281 = memref.load %arg1[%c45] : memref<50xf32, #tpu.memory_space<smem>>
    %282 = vector.broadcast %281 : f32 to vector<1x256xf32>
    %283 = arith.mulf %282, %276 : vector<1x256xf32>
    %284 = arith.addf %280, %283 : vector<1x256xf32>
    %c21 = arith.constant 21 : index
    %c0_136 = arith.constant 0 : index
    %285 = vector.load %arg2[%c21, %c0_136] : memref<25x256xf32, #tpu.memory_space<vmem>>, vector<1x256xf32>
    %c0_137 = arith.constant 0 : index
    %c65 = arith.constant 65 : index
    %286 = vector.load %arg6[%c0_137, %c65] : memref<1x324xf32, #tpu.memory_space<vmem>>, vector<1x256xf32>
    %287 = arith.mulf %286, %285 : vector<1x256xf32>
    %c0_138 = arith.constant 0 : index
    %c65_139 = arith.constant 65 : index
    %288 = vector.load %arg7[%c0_138, %c65_139] : memref<1x324xf32, #tpu.memory_space<vmem>>, vector<1x256xf32>
    %289 = arith.mulf %288, %285 : vector<1x256xf32>
    %c21_140 = arith.constant 21 : index
    %290 = memref.load %arg1[%c21_140] : memref<50xf32, #tpu.memory_space<smem>>
    %291 = vector.broadcast %290 : f32 to vector<1x256xf32>
    %292 = arith.mulf %291, %287 : vector<1x256xf32>
    %293 = arith.addf %284, %292 : vector<1x256xf32>
    %c46 = arith.constant 46 : index
    %294 = memref.load %arg1[%c46] : memref<50xf32, #tpu.memory_space<smem>>
    %295 = vector.broadcast %294 : f32 to vector<1x256xf32>
    %296 = arith.mulf %295, %289 : vector<1x256xf32>
    %297 = arith.addf %293, %296 : vector<1x256xf32>
    %c22 = arith.constant 22 : index
    %c0_141 = arith.constant 0 : index
    %298 = vector.load %arg2[%c22, %c0_141] : memref<25x256xf32, #tpu.memory_space<vmem>>, vector<1x256xf32>
    %c0_142 = arith.constant 0 : index
    %c66 = arith.constant 66 : index
    %299 = vector.load %arg6[%c0_142, %c66] : memref<1x324xf32, #tpu.memory_space<vmem>>, vector<1x256xf32>
    %300 = arith.mulf %299, %298 : vector<1x256xf32>
    %c0_143 = arith.constant 0 : index
    %c66_144 = arith.constant 66 : index
    %301 = vector.load %arg7[%c0_143, %c66_144] : memref<1x324xf32, #tpu.memory_space<vmem>>, vector<1x256xf32>
    %302 = arith.mulf %301, %298 : vector<1x256xf32>
    %c22_145 = arith.constant 22 : index
    %303 = memref.load %arg1[%c22_145] : memref<50xf32, #tpu.memory_space<smem>>
    %304 = vector.broadcast %303 : f32 to vector<1x256xf32>
    %305 = arith.mulf %304, %300 : vector<1x256xf32>
    %306 = arith.addf %297, %305 : vector<1x256xf32>
    %c47 = arith.constant 47 : index
    %307 = memref.load %arg1[%c47] : memref<50xf32, #tpu.memory_space<smem>>
    %308 = vector.broadcast %307 : f32 to vector<1x256xf32>
    %309 = arith.mulf %308, %302 : vector<1x256xf32>
    %310 = arith.addf %306, %309 : vector<1x256xf32>
    %c23 = arith.constant 23 : index
    %c0_146 = arith.constant 0 : index
    %311 = vector.load %arg2[%c23, %c0_146] : memref<25x256xf32, #tpu.memory_space<vmem>>, vector<1x256xf32>
    %c0_147 = arith.constant 0 : index
    %c67 = arith.constant 67 : index
    %312 = vector.load %arg6[%c0_147, %c67] : memref<1x324xf32, #tpu.memory_space<vmem>>, vector<1x256xf32>
    %313 = arith.mulf %312, %311 : vector<1x256xf32>
    %c0_148 = arith.constant 0 : index
    %c67_149 = arith.constant 67 : index
    %314 = vector.load %arg7[%c0_148, %c67_149] : memref<1x324xf32, #tpu.memory_space<vmem>>, vector<1x256xf32>
    %315 = arith.mulf %314, %311 : vector<1x256xf32>
    %c23_150 = arith.constant 23 : index
    %316 = memref.load %arg1[%c23_150] : memref<50xf32, #tpu.memory_space<smem>>
    %317 = vector.broadcast %316 : f32 to vector<1x256xf32>
    %318 = arith.mulf %317, %313 : vector<1x256xf32>
    %319 = arith.addf %310, %318 : vector<1x256xf32>
    %c48_151 = arith.constant 48 : index
    %320 = memref.load %arg1[%c48_151] : memref<50xf32, #tpu.memory_space<smem>>
    %321 = vector.broadcast %320 : f32 to vector<1x256xf32>
    %322 = arith.mulf %321, %315 : vector<1x256xf32>
    %323 = arith.addf %319, %322 : vector<1x256xf32>
    %c24 = arith.constant 24 : index
    %c0_152 = arith.constant 0 : index
    %324 = vector.load %arg2[%c24, %c0_152] : memref<25x256xf32, #tpu.memory_space<vmem>>, vector<1x256xf32>
    %c0_153 = arith.constant 0 : index
    %c68 = arith.constant 68 : index
    %325 = vector.load %arg6[%c0_153, %c68] : memref<1x324xf32, #tpu.memory_space<vmem>>, vector<1x256xf32>
    %326 = arith.mulf %325, %324 : vector<1x256xf32>
    %c0_154 = arith.constant 0 : index
    %c68_155 = arith.constant 68 : index
    %327 = vector.load %arg7[%c0_154, %c68_155] : memref<1x324xf32, #tpu.memory_space<vmem>>, vector<1x256xf32>
    %328 = arith.mulf %327, %324 : vector<1x256xf32>
    %c24_156 = arith.constant 24 : index
    %329 = memref.load %arg1[%c24_156] : memref<50xf32, #tpu.memory_space<smem>>
    %330 = vector.broadcast %329 : f32 to vector<1x256xf32>
    %331 = arith.mulf %330, %326 : vector<1x256xf32>
    %332 = arith.addf %323, %331 : vector<1x256xf32>
    %c49_157 = arith.constant 49 : index
    %333 = memref.load %arg1[%c49_157] : memref<50xf32, #tpu.memory_space<smem>>
    %334 = vector.broadcast %333 : f32 to vector<1x256xf32>
    %335 = arith.mulf %334, %328 : vector<1x256xf32>
    %336 = arith.addf %332, %335 : vector<1x256xf32>
    %337 = vector.shape_cast %336 : vector<1x256xf32> to vector<1x1x256xf32>
    %c0_158 = arith.constant 0 : index
    %c0_159 = arith.constant 0 : index
    %c0_160 = arith.constant 0 : index
    %338 = vector.load %arg4[%c0_158, %c0_159, %c0_160] : memref<1x1x256xf32, #tpu.memory_space<vmem>>, vector<1x1x256xf32>
    tpu.vector_store %arg4[%c0_158, %c0_159, %c0_160], %337 {strides = array<i32>} : memref<1x1x256xf32, #tpu.memory_space<vmem>>, vector<1x1x256xf32>,
    %339 = vector.shape_cast %336 : vector<1x256xf32> to vector<1x1x256xf32>
    %cst_161 = arith.constant dense<0.000000e+00> : vector<1xf32>
    %340 = vector.multi_reduction <add>, %339, %cst_161 [1, 2] : vector<1x1x256xf32> to vector<1xf32>
    %341 = vector.shape_cast %340 : vector<1xf32> to vector<1x1x1xf32>
    %342 = vector.extract %341[0, 0, 0] : f32 from vector<1x1x1xf32>
    %343 = arith.mulf %336, %336 : vector<1x256xf32>
    %344 = vector.shape_cast %343 : vector<1x256xf32> to vector<1x1x256xf32>
    %cst_162 = arith.constant dense<0.000000e+00> : vector<1xf32>
    %345 = vector.multi_reduction <add>, %344, %cst_162 [1, 2] : vector<1x1x256xf32> to vector<1xf32>
    %346 = vector.shape_cast %345 : vector<1xf32> to vector<1x1x1xf32>
    %347 = vector.extract %346[0, 0, 0] : f32 from vector<1x1x1xf32>
    %348 = tpu.iota {dimensions = array<i32: 2>} : vector<1x1x128xi32>
    %c0_i32 = arith.constant 0 : i32
    %349 = vector.broadcast %c0_i32 : i32 to vector<1x1x128xi32>
    %350 = arith.cmpi eq, %348, %349 : vector<1x1x128xi32>
    %c1_i32 = arith.constant 1 : i32
    %351 = vector.broadcast %c1_i32 : i32 to vector<1x1x128xi32>
    %352 = arith.cmpi eq, %348, %351 : vector<1x1x128xi32>
    %cst_163 = arith.constant 0.000000e+00 : f32
    %353 = vector.broadcast %347 : f32 to vector<1x1x128xf32>
    %354 = vector.broadcast %cst_163 : f32 to vector<1x1x128xf32>
    %355 = arith.select %352, %353, %354 : vector<1x1x128xi1>, vector<1x1x128xf32>
    %356 = vector.broadcast %342 : f32 to vector<1x1x128xf32>
    %357 = arith.select %350, %356, %355 : vector<1x1x128xi1>, vector<1x1x128xf32>
    %c0_164 = arith.constant 0 : index
    %c0_165 = arith.constant 0 : index
    %c0_166 = arith.constant 0 : index
    %358 = vector.load %arg5[%c0_164, %c0_165, %c0_166] : memref<1x1x128xf32, #tpu.memory_space<vmem>>, vector<1x1x128xf32>
    tpu.vector_store %arg5[%c0_164, %c0_165, %c0_166], %357 {strides = array<i32>} : memref<1x1x128xf32, #tpu.memory_space<vmem>>, vector<1x1x128xf32>,
    return
  }
  func.func @transform_0(%arg0: i32) -> i32 {
    %c0_i32 = arith.constant 0 : i32
    %c0_i32_0 = arith.constant 0 : i32
    return %c0_i32 : i32
  }
  func.func @transform_1(%arg0: i32) -> (i32, i32) {
    %c0_i32 = arith.constant 0 : i32
    %c0_i32_0 = arith.constant 0 : i32
    %c0_i32_1 = arith.constant 0 : i32
    return %c0_i32, %c0_i32_0 : i32, i32
  }
  func.func @transform_2(%arg0: i32) -> (i32, i32, i32) {
    %c0_i32 = arith.constant 0 : i32
    %c0_i32_0 = arith.constant 0 : i32
    %c0_i32_1 = arith.constant 0 : i32
    return %arg0, %c0_i32, %c0_i32_0 : i32, i32, i32
  }
  func.func @transform_3(%arg0: i32) -> (i32, i32, i32) {
    %c0_i32 = arith.constant 0 : i32
    %c0_i32_0 = arith.constant 0 : i32
    %c0_i32_1 = arith.constant 0 : i32
    return %arg0, %c0_i32, %c0_i32_0 : i32, i32, i32
  }
  func.func @transform_4(%arg0: i32) -> (i32, i32, i32) {
    %c0_i32 = arith.constant 0 : i32
    %c0_i32_0 = arith.constant 0 : i32
    %c0_i32_1 = arith.constant 0 : i32
    return %arg0, %c0_i32, %c0_i32_0 : i32, i32, i32
  }
}

</mosaic_0001>

<bundles_post_ra>
// kernel: tpu_custom_call.1
= control target key start
LH: loop header
LB: loop body
LE: loop exit
PB: predicated region body
PF: predicated region fallthrough
CT: control target
= control target key end

     0   :  { %10 = vsyncpa [#allocation7], 0  ;;  %s2263_s0 = inlined_call_operand.hbm [shape: f32[50], index: 0, kind: input, shape index: {}]   ;;  %s2264_s1 = inlined_call_operand.hbm [shape: f32[25,256], index: 1, kind: input, shape index: {}]   ;;  %s2265_s2 = inlined_call_operand.hbm [shape: f32[2,4,256], index: 2, kind: input, shape index: {}]   ;;  %s2266_s3 = inlined_call_operand.hbm [shape: f32[2,1,256], index: 3, kind: output, shape index: {0}]   ;;  %s2267_s4 = inlined_call_operand.hbm [shape: f32[2,1,128], index: 4, kind: output, shape index: {1}]  }
   0x1   :  { %11 = vsyncpa [#allocation5], 0 }
   0x2   :  { %12 = vsyncpa [#allocation10], 0 }
   0x3   :  { %14 = vsyncpa [#allocation10 + $0x1], 0 }
   0x4   :  { %15 = vsyncpa [#allocation6], 0 }
   0x5   :  { %17 = vsyncpa [#allocation6 + $0x1], 0 }
   0x6   :  { %18 = vsyncpa [#allocation13], 0 }
   0x7   :  { %20 = vsyncpa [#allocation13 + $0x1], 0  ;;  %s1778_s15 = smov 0   ;;  %s1780_s16 = smov 0  }
   0x8   :  { %s1782_s17 = smov 0   ;;  %s1784_s18 = smov 0  }
   0x9 LB: > { %s1799_s19 = sadd.s32 4294967295, %s1698_s18   ;;  %s1321_s20 = sadd.s32 4294967294, %s1698_s18   ;;  %s1698_s18 = sphi %s1784_s18, %s2283_s18   ;;  %s1694_s17 = sphi %s1782_s17, %s2282_s17   ;;  %s1690_s16 = sphi %s1780_s16, %s2281_s16   ;;  %s1686_s15 = sphi %s1778_s15, %s2280_s15  }
   0xa   : > { %p88_p0 = scmp.ne.s32.totalorder %s1690_s16, %s1686_s15  ;;  %p89_p1 = scmp.eq.s32.totalorder %s1799_s19, 0 }
   0xb   : > { %p112_p2 = scmp.eq.s32.totalorder %s1799_s19, 1  ;;  %p118_p3 = scmp.eq.s32.totalorder %s1321_s20, 1 }
   0xc   : > { %p1808_p4 = por %p89_p1, %p88_p0  ;;  %p1322_p5 = scmp.ge.s32.totalorder %s1698_s18, 1 }
   0xd   : > { %p1813_p6 = por %p118_p3, %p88_p0  ;;  %p151_p7 = scmp.lt.s32.totalorder %s1698_s18, 3 }
   0xe   : > { %s163_s25 = sshll.u32 %s2263_s0, 4  ;;  %s172_s29 = sshll.u32 %s2264_s1, 4  ;;  %s164_s25 = int_to_ptr.hbm [resolvable:$true] %s163_s25  ;;  %s173_s29 = int_to_ptr.hbm [resolvable:$true] %s172_s29 }
   0xf   : > { %p1821_p8 = pnand %p1322_p5, %p151_p7  ;;  %s1700_s30 = smov [#allocation8]  }
  0x10   : > { %s174_s5 = sshll.u32 %s1700_s30, 4  ;;  %s1701_s6 = smov [#allocation4]   ;;  %s175_s5 = int_to_ptr.vmem [resolvable:$true] %s174_s5 }
  0x11   : > { %p1406_p10 = pneg %p1821_p8  ;;  %s1702_s7 = smov 256  }
  0x12   : > { %s1703_s8 = smov 16   ;;  %s1834_s9 = sadd.s32 1, %s1698_s18  }
  0x13   : > { %p1407_p11 = pnand %p1406_p10, %p89_p1  ;;  %s72_s10 = ssub.s32 %s1698_s18, %s1834_s9 }
  0x14   : > { %p73_p12 = scmp.eq.s32.totalorder %s72_s10, 0  ;;  %s75_s11 = sadd.s32 1, %s1694_s17 }
  0x15   : > { %1409 = dma.hbm_to_smem (!%p1407_p11), %s164_s25, 16, %s1701_s6, [#allocation7]  }
  0x16   : > { %1412 = dma.hbm_to_vmem [thread:$0]  (!%p1407_p11), %s173_s29, 1024, %s175_s5, [#allocation5], %s1702_s7, %s1702_s7, %s1703_s8  }
  0x17   : > { %p82_p13 = scmp.ne.s32.totalorder %s1694_s17, %s1690_s16  ;;  %p83_p0 = scmp.eq.s32.totalorder %s1698_s18, 0 }
  0x18   : > { %s1843_s12 = scalar_select %p73_p12, %s1694_s17, %s75_s11  }
  0x19   : > { %p84_p3 = por %p83_p0, %p82_p13  ;;  %p1847_p5 = por %p112_p2, %p82_p13 }
  0x1a   : > { %p1426_p7 = scmp.lt.s32.totalorder %s1698_s18, 2  ;;  %s188_s14 = sand.u32 1, %s1694_s17  }
  0x1b   : > { %s1326_s20 = sshll.u32 %s188_s14, 3  ;;  %s1387_s23 = sshll.u32 %s1698_s18, 3 }
  0x1c   : > { %s197_s27 = scalar_lea.hbm %s2265_s2, %s1387_s23  ;;  %s192_s28 = scalar_lea.vmem [#allocation9], %s1326_s20 }
  0x1d   : > { %s201_s29 = sshll.u32 %s192_s28, 4  ;;  %s199_s30 = sshll.u32 %s197_s27, 4  ;;  %s202_s29 = int_to_ptr.vmem [resolvable:$true] %s201_s29  ;;  %s200_s30 = int_to_ptr.hbm [resolvable:$true] %s199_s30 }
  0x1e   : > { %p1857_p10 = pnand %p1426_p7, %p84_p3  ;;  %s189_s6 = scalar_lea.sflag [#allocation10], %s188_s14 }
  0x1f   : > { %s1562_s7 = sshra.s32 %s200_s30, 4  ;;  %s1569_s20 = scalar_lea.hbm %s2265_s2, 16  ;;  %s1563_s7 = int_to_ptr.hbm [resolvable:$true] %s1562_s7 }
  0x20   : > { %s1564_s8 = scalar_lea.hbm %s1563_s7, 8  ;;  %p1566_p11 = pneg %p1857_p10 }
  0x21   : > { %p1565_p2 = scmp.ne.s32.totalorder %s1563_s7, %s1564_s8  ;;  %p1570_p0 = scmp.lt.s32.totalorder %s1563_s7, %s2265_s2 }
  0x22   : > { %p1571_p3 = scmp.lt.s32.totalorder %s1569_s20, %s1564_s8 }
  0x23   : > { %p1567_p12 = pnand %p1566_p11, %p1565_p2 }
  0x24   : > { %p1572_p7 = por %p1571_p3, %p1570_p0 }
  0x25   : > { %p1568_p13 = pneg %p1567_p12 }
  0x27   : > { %p1573_p9 = pnand %p1572_p7, %p1568_p13 }
  0x29   : > { %1576 = shalt.err (!%p1573_p9)
}
  0x2a   : > { %1416 = dma.hbm_to_vmem [thread:$0]  (!%p1857_p10), %s200_s30, 128, %s202_s29, %s189_s6  }
  0x2b   : > { %210 = sbr.rel (%p1821_p8) target bundleno = 702 (0x2be), region = 32 }
  0x30   : > { %1665 = dma.done.wait (%p89_p1), [#allocation7], 16  }
  0x31   : > { %1667 = vsyncadd (%p89_p1), [#allocation7], 4294967280 }
  0x32   : > { %1669 = dma.done.wait (%p89_p1), [#allocation5], 1024  }
  0x33   : > { %1671 = vsyncadd (%p89_p1), [#allocation5], 4294966272  ;;  %s1882_s14 = sand.u32 1, %s1690_s16  }
  0x34   : > { %s1332_s26 = sshll.u32 %s1882_s14, 3  ;;  %s223_s25 = scalar_lea.sflag [#allocation10], %s1882_s14 }
  0x35   : > { %s226_s27 = scalar_lea.vmem [#allocation9], %s1332_s26 }
  0x36   : > { %1673 = dma.done.wait (%p1808_p4), %s223_s25, 128  }
  0x37   : > { %1675 = vsyncadd (%p1808_p4), %s223_s25, 4294967168 }
  0x38   : > { %232 = sfence }
  0x39   : > { %v482_v0 = vld [vmem:[#allocation8 + $0x5] ss:$8 sm:$0x3]  ;;  %s1704_s28 = smov 16   ;;  %s1705_s29 = smov 1   ;;  %v1706_v4 = vmov 4.0  }
  0x3a   : > { %484 = vrot.lane.b32.xlu0 %v482_v0, %s1704_s28  ;;  %v352_v1 = vld [vmem:[#allocation8 + $0x1] ss:$8 sm:$0x3]  ;;  %v578_v3 = vld [vmem:[#allocation8 + $0x10] ss:$8 sm:$0x3]  ;;  %1515 = vrcp.f32 %v1706_v4  ;;  %v307_v4 = vlaneseq }
  0x3b   : > { %355 = vrot.lane.b32.xlu1 %v352_v1, %s1705_s29  ;;  %v257_v2 = vld [vmem:[%s226_s27] sm:$0xff]  ;;  %s1707_s30 = smov 19   ;;  %s1708_s5 = smov 2   ;;  %vm264_vm0 = vcmask 1043456   ;;  %vm316_vm1 = vcmask 1040384   ;;  %vm321_vm6 = vcmask 277504  }
  0x3c   : > { %259 = vst [vmem:[#allocation1] ss:$2 sm:$0xff] %v257_v2  ;;  %v386_v5 = vld [vmem:[#allocation8 + $0x2] ss:$8 sm:$0x3]  ;;  %s1709_s21 = smov 33  }
  0x3d   : > { %v674_v11 = vld [vmem:[#allocation8 + $0x13] ss:$8 sm:$0x3]  ;;  %v514_v14 = vld [vmem:[#allocation8 + $0x6] ss:$8 sm:$0x3] }
  0x3e   : > { %s1710_s6 = smov 17   ;;  %v418_v20 = vld [vmem:[#allocation8 + $0x3] ss:$8 sm:$0x3]  ;;  %s1711_s7 = smov 3   ;;  %vm309_vm3 = vcmp.lt.s32.totalorder %v307_v4, 324 }
  0x3f   : > { %420 = vrot.lane.b32.xlu2 %v418_v20, %s1711_s7  ;;  %v610_v32 = vld [vmem:[#allocation8 + $0x11] ss:$8 sm:$0x3]  ;;  %s1712_s8 = smov 20   ;;  %s1713_s10 = smov 4   ;;  %vm1909_vm4 = vcmp.ge.s32.totalorder %v307_v4, 34 }
  0x40   : > { %v1516_v6 = vpop.eup %1515  ;;  %v450_v41 = vld [vmem:[#allocation8 + $0x4] ss:$8 sm:$0x3]  ;;  %s1714_s11 = smov 34   ;;  %s1715_s20 = smov 18   ;;  %vm1914_vm5 = vcmp.lt.s32.totalorder %v307_v4, 290 }
  0x41   : > { %v299_v15 = vmul.f32 4.0, %v1516_v6  ;;  %vm303_vm2 = vweird.f32 %v1516_v6  ;;  %v706_v48 = vld [vmem:[#allocation8 + $0x14] ss:$8 sm:$0x3]  ;;  %s1716_s23 = smov 35   ;;  %s1717_s24 = smov 32   ;;  %vm326_vm7 = vmand %vm1909_vm4, %vm1914_vm5 }
  0x42   : > { %580 = vrot.lane.b32.xlu0 %v578_v3, %s1707_s30  ;;  %v546_v54 = vld [vmem:[#allocation8 + $0x7] ss:$8 sm:$0x3]  ;;  %v737_v57 = vld [vmem:[#allocation8 + $0x15] ss:$8 sm:$0x3] }
  0x43   : > { %388 = vrot.lane.b32.xlu1 %v386_v5, %s1708_s5  ;;  %v260_v7 = vld.sshfl [vmem:[#allocation1] sm:$0xff pattern:$0x75316420]  ;;  %v261_v8 = vld.sshfl [vmem:[#allocation1 + $0x8] sm:$0xff pattern:$0x75316420] }
  0x44   : > { %v265_v9 = vsel %vm264_vm0, %v260_v7, -inf  ;;  %v272_v10 = vsel %vm264_vm0, %v261_v8, -inf  ;;  %279 = vst [vmem:[#allocation1] ss:$2 sm:$0xff] %v257_v2  ;;  %v300_v21 = vsub.f32 1.0, %v299_v15  ;;  %s1718_s26 = smov 36  }
  0x45   : > { %v266_v12 = vrot.slane %v265_v9, 4  ;;  %v273_v13 = vrot.slane %v272_v10, 4  ;;  %v642_v58 = vld [vmem:[#allocation8 + $0x12] ss:$8 sm:$0x3]  ;;  %s1719_s25 = smov 48  }
  0x46   : > { %v301_v33 = vmul.f32 %v1516_v6, %v300_v21  ;;  %v769_v59 = vld [vmem:[#allocation8 + $0x16] ss:$8 sm:$0x3]  ;;  %v801_v60 = vld [vmem:[#allocation8 + $0x17] ss:$8 sm:$0x3] }
  0x47   : > { %v267_v16 = vmax.f32 %v265_v9, %v266_v12  ;;  %v274_v17 = vmax.f32 %v272_v10, %v273_v13  ;;  %452 = vrot.lane.b32.xlu2 %v450_v41, %s1713_s10  ;;  %v833_v61 = vld [vmem:[#allocation8 + $0x20] ss:$8 sm:$0x3]  ;;  %s1720_s27 = smov 49   ;;  %s1721_s28 = smov 50   ;;  %v1727_v5 = vmov 0.0  }
  0x48   : > { %v302_v42 = vadd.f32 %v1516_v6, %v301_v33  ;;  %v865_v62 = vld [vmem:[#allocation8 + $0x21] ss:$8 sm:$0x3]  ;;  %v897_v63 = vld [vmem:[#allocation8 + $0x22] ss:$8 sm:$0x3] }
  0x49   : > { %v268_v18 = vrot.slane %v267_v16, 2  ;;  %v275_v19 = vrot.slane %v274_v17, 2  ;;  %s1722_s29 = smov 51   ;;  %v929_v0 = vld [vmem:[#allocation8 + $0x23] ss:$8 sm:$0x3] }
  0x4a   : > { %676 = vrot.lane.b32.xlu0 %v674_v11, %s1709_s21  ;;  %v304_v49 = vsel %vm303_vm2, %v1516_v6, %v302_v42  ;;  %s1723_s30 = smov 52   ;;  %v961_v1 = vld [vmem:[#allocation8 + $0x24] ss:$8 sm:$0x3]  ;;  %s1724_s5 = smov 64   ;;  %vm358_vm8 = vcmask 7168  }
  0x4b   : > { %516 = vrot.lane.b32.xlu1 %v514_v14, %s1710_s6  ;;  %v269_v22 = vmax.f32 %v267_v16, %v268_v18  ;;  %v276_v23 = vmax.f32 %v274_v17, %v275_v19  ;;  %v280_v24 = vld.sshfl [vmem:[#allocation1] sm:$0xff pattern:$0x75316420]  ;;  %v281_v25 = vld.sshfl [vmem:[#allocation1 + $0x8] sm:$0xff pattern:$0x75316420] }
  0x4c   : > { %v284_v26 = vsel %vm264_vm0, %v280_v24, 0.0  ;;  %v291_v27 = vsel %vm264_vm0, %v281_v25, 0.0  ;;  %v992_v2 = vld [vmem:[#allocation8 + $0x25] ss:$8 sm:$0x3]  ;;  %s1725_s21 = smov 65  }
  0x4d   : > { %v270_v28 = vrot.slane %v269_v22, 1  ;;  %v277_v29 = vrot.slane %v276_v23, 1  ;;  %v285_v30 = vrot.slane %v284_v26, 4  ;;  %v292_v31 = vrot.slane %v291_v27, 4  ;;  %s1726_s6 = smov 66   ;;  %s1728_s7 = smov 67  }
  0x4e   : > { %v1024_v3 = vld [vmem:[#allocation8 + $0x26] ss:$8 sm:$0x3]  ;;  %311 = vst.msk [vmem:[#allocation2] sm:$0x7] %vm309_vm3, %v1727_v5  ;;  %s1335_s10 = sld [smem:[#allocation4 + $0x1]] }
  0x4f   : > { %v271_v34 = vmax.f32 %v269_v22, %v270_v28  ;;  %v278_v35 = vmax.f32 %v276_v23, %v277_v29  ;;  %v286_v36 = vadd.f32 %v285_v30, %v284_v26  ;;  %v293_v37 = vadd.f32 %v292_v31, %v291_v27  ;;  %548 = vrot.lane.b32.xlu2 %v546_v54, %s1715_s20  ;;  %v1056_v8 = vld [vmem:[#allocation8 + $0x27] ss:$8 sm:$0x3]  ;;  %v1088_v11 = vld [vmem:[#allocation8 + $0x30] ss:$8 sm:$0x3] }
  0x50   : > { %312 = vst.msk [vmem:[#allocation3] sm:$0x7] %vm309_vm3, %v1727_v5  ;;  %vm391_vm9 = vcmask 15360   ;;  %s1730_s20 = smov 127   ;;  %vm423_vm10 = vcmask 23552   ;;  %vm774_vm11 = vcmask 293888  }
  0x51   : > { %v315_v38 = vrot.slane %v278_v35, 7  ;;  %v287_v39 = vrot.slane %v286_v36, 2  ;;  %v294_v40 = vrot.slane %v293_v37, 2  ;;  %vm455_vm12 = vcmask 31744  }
  0x52   : > { %vm806_vm13 = vcmask 392192   ;;  %vm487_vm14 = vcmask 130048   ;;  %vm870_vm15 = vcmask 408576   ;;  %vm519_vm0 = vcmask 138240  }
  0x53   : > { %612 = vrot.lane.b32.xlu1 %v610_v32, %s1712_s8  ;;  %v317_v43 = vsel %vm316_vm1, %v271_v34, %v315_v38  ;;  %v288_v44 = vadd.f32 %v287_v39, %v286_v36  ;;  %v295_v45 = vadd.f32 %v294_v40, %v293_v37  ;;  %s1729_s8 = smov 68   ;;  %vm551_vm2 = vcmask 146432  }
  0x54   : > { %318 = vrot.lane.b32.xlu0 %v317_v43, %s1714_s11  ;;  %v365_v28 = vstv %s1335_s10  ;;  %s1367_s10 = sld [smem:[#allocation4 + $0x11]]  ;;  %vm902_vm3 = vcmask 416768   ;;  %vm583_vm4 = vcmask 154624   ;;  %vm966_vm5 = vcmask 523264  }
  0x55   : > { %v289_v46 = vrot.slane %v288_v44, 1  ;;  %v296_v47 = vrot.slane %v295_v45, 1 }
  0x57   : > { %v290_v50 = vadd.f32 %v289_v46, %v288_v44  ;;  %v297_v51 = vadd.f32 %v296_v47, %v295_v45  ;;  %644 = vrot.lane.b32.xlu2 %v642_v58, %s1717_s24  ;;  %s1339_s24 = sld [smem:[#allocation4 + $0x3]] }
  0x59   : > { %v305_v52 = vmul.f32 %v304_v49, %v290_v50  ;;  %v306_v53 = vmul.f32 %v304_v49, %v297_v51 }
  0x5b   : > { %708 = vrot.lane.b32.xlu1 %v706_v48, %s1714_s11  ;;  %v330_v55 = vrot.slane %v306_v53, 7 }
  0x5d   : > { %v331_v56 = vsel %vm316_vm1, %v305_v52, %v330_v55  ;;  %v429_v47 = vstv %s1339_s24  ;;  %s1736_s24 = smov 112  }
  0x5e   : > { %332 = vrot.lane.b32.xlu0 %v331_v56, %s1714_s11  ;;  %s1337_s11 = sld [smem:[#allocation4 + $0x2]] }
  0x63   : > { %739 = vrot.lane.b32.xlu1 %v737_v57, %s1716_s23  ;;  %s1361_s23 = sld [smem:[#allocation4 + $0xe]] }
  0x64   : > { %v397_v38 = vstv %s1337_s11  ;;  %s1982_s11 = sld [smem:[#allocation4 + $0x6]] }
  0x69   : > { %v780_v45 = vstv %s1361_s23  ;;  %s1988_s23 = sld [smem:[#allocation4 + $0x28]] }
  0x6b   : > { %771 = vrot.lane.b32.xlu1 %v769_v59, %s1718_s26  ;;  %s1731_s26 = smov 126  }
  0x73   : > { %803 = vrot.lane.b32.xlu1 %v801_v60, %s1719_s25  ;;  %s1363_s25 = sld [smem:[#allocation4 + $0xf]] }
  0x79   : > { %v812_v56 = vstv %s1363_s25  ;;  %s1340_s25 = sld [smem:[#allocation4 + $0x1c]] }
  0x7b   : > { %835 = vrot.lane.b32.xlu1 %v833_v61, %s1720_s27  ;;  %s1341_s27 = sld [smem:[#allocation4 + $0x4]] }
  0x81   : > { %v461_v60 = vstv %s1341_s27  ;;  %s1737_s27 = smov 78  }
  0x83   : > { %867 = vrot.lane.b32.xlu1 %v865_v62, %s1721_s28  ;;  %s1732_s28 = smov 92  }
  0x8b   : > { %899 = vrot.lane.b32.xlu1 %v897_v63, %s1722_s29  ;;  %s1733_s29 = smov 125  }
  0x93   : > { %931 = vrot.lane.b32.xlu1 %v929_v0, %s1723_s30  ;;  %s1336_s30 = sld [smem:[#allocation4 + $0x1a]] }
  0x99   : > { %v421_v34 = vpop.permute.xlu2 %420 }
  0x9a   : > { %v422_v36 = vrot.slane %v421_v34, 7 }
  0x9b   : > { %963 = vrot.lane.b32.xlu1 %v961_v1, %s1724_s5 }
  0x9c   : > { %v1950_v39 = vsel %vm423_vm10, %v422_v36, %v421_v34  ;;  %v823_v36 = vstv %s1988_s23  ;;  %s2030_s23 = sld [smem:[#allocation4 + $0x14]]  ;;  %vm1061_vm10 = vcmask 547840  }
  0xa1   : > { %v453_v48 = vpop.permute.xlu2 %452 }
  0xa2   : > { %v454_v49 = vrot.slane %v453_v48, 7 }
  0xa3   : > { %994 = vrot.lane.b32.xlu1 %v992_v2, %s1725_s21  ;;  %s1343_s21 = sld [smem:[#allocation4 + $0x5]]  ;;  %v376_v2 = vstv %s1336_s30 }
  0xa4   : > { %v1960_v54 = vsel %vm455_vm12, %v454_v49, %v453_v48  ;;  %s2009_s30 = sld [smem:[#allocation4 + $0x1d]]  ;;  %vm1093_vm12 = vcmask 556032  }
  0xab   : > { %1026 = vrot.lane.b32.xlu1 %v1024_v3, %s1726_s6  ;;  %s1734_s6 = smov 80  }
  0xac   : > { %v1898_v6 = vpop.permute.xlu0 %484 }
  0xad   : > { %v356_v7 = vpop.permute.xlu1 %355  ;;  %v486_v62 = vrot.slane %v1898_v6, 7 }
  0xae   : > { %v357_v22 = vrot.slane %v356_v7, 7 }
  0xaf   : > { %v1978_v3 = vsel %vm487_vm14, %v486_v62, %v1898_v6  ;;  %vm934_vm14 = vcmask 424960  }
  0xb0   : > { %v1931_v25 = vsel %vm358_vm8, %v357_v22, %v356_v7  ;;  %v493_v7 = vstv %s1343_s21  ;;  %v549_v22 = vpop.permute.xlu2 %548  ;;  %s1738_s21 = smov 111   ;;  %vm997_vm8 = vcmask 531456  }
  0xb3   : > { %1058 = vrot.lane.b32.xlu1 %v1056_v8, %s1728_s7  ;;  %s1974_s7 = sld [smem:[#allocation4 + $0x1b]] }
  0xb4   : > { %v1900_v9 = vpop.permute.xlu0 %580 }
  0xb5   : > { %v389_v10 = vpop.permute.xlu1 %388 }
  0xb6   : > { %v390_v30 = vrot.slane %v389_v10, 7 }
  0xb8   : > { %v1946_v35 = vsel %vm391_vm9, %v390_v30, %v389_v10  ;;  %vm679_vm9 = vcmask 269312  }
  0xbb   : > { %1090 = vrot.lane.b32.xlu1 %v1088_v11, %s1729_s8  ;;  %s1735_s8 = smov 124  }
  0xbc   : > { %v1904_v13 = vpop.permute.xlu0 %676 }
  0xbd   : > { %v1902_v12 = vpop.permute.xlu1 %516 }
  0xbe   : > { %v518_v10 = vrot.slane %v1902_v12, 7 }
  0xc5   : > { %v1906_v14 = vpop.permute.xlu1 %612 }
  0xc6   : > { %v319_v17 = vpop.permute.xlu0 %318 }
  0xc7   : > { %v320_v18 = vrot.slane %v319_v17, 7 }
  0xc9   : > { %v322_v19 = vsel %vm321_vm6, %v320_v18, %v319_v17  ;;  %v876_v18 = vstv %s1367_s10  ;;  %s2026_s10 = sld [smem:[#allocation4 + $0x1e]] }
  0xca   : > { %327 = vst.msk [vmem:[#allocation2] sm:$0x7] %vm326_vm7, %v322_v19  ;;  %v408_v19 = vstv %s1974_s7  ;;  %s1370_s7 = sld [smem:[#allocation4 + $0x2b]] }
  0xcd   : > { %v709_v20 = vpop.permute.xlu1 %708 }
  0xce   : > { %v710_v21 = vrot.slane %v709_v20, 7 }
  0xd0   : > { %v1929_v23 = vsel %vm321_vm6, %v710_v21, %v709_v20  ;;  %v333_v24 = vpop.permute.xlu0 %332  ;;  %v1995_v20 = vsel %vm519_vm0, %v518_v10, %v1902_v12  ;;  %v919_v49 = vstv %s1370_s7  ;;  %s1742_s7 = smov 108   ;;  %vm371_vm0 = vcmask 1039360  }
  0xd1   : > { %v1933_v26 = vld [vmem:[#allocation2] sm:$0x7]  ;;  %v334_v27 = vrot.slane %v333_v24, 7 }
  0xd2   : > { %v361_v29 = vmul.f32 %v1931_v25, %v1933_v26  ;;  %v394_v37 = vmul.f32 %v1946_v35, %v1933_v26  ;;  %v426_v43 = vmul.f32 %v1950_v39, %v1933_v26  ;;  %v458_v58 = vmul.f32 %v1960_v54, %v1933_v26 }
  0xd3   : > { %v335_v31 = vsel %vm321_vm6, %v334_v27, %v333_v24  ;;  %v490_v5 = vmul.f32 %v1978_v3, %v1933_v26  ;;  %v522_v24 = vmul.f32 %v1995_v20, %v1933_v26  ;;  %vm615_vm6 = vcmask 162816  }
  0xd4   : > { %337 = vst.msk [vmem:[#allocation3] sm:$0x7] %vm326_vm7, %v335_v31  ;;  %v366_v33 = vmul.f32 %v365_v28, %v361_v29  ;;  %v398_v42 = vmul.f32 %v397_v38, %v394_v37  ;;  %v430_v51 = vmul.f32 %v429_v47, %v426_v43  ;;  %v462_v0 = vmul.f32 %v461_v60, %v458_v58  ;;  %v645_v60 = vpop.permute.xlu2 %644 }
  0xd5   : > { %v1938_v32 = vpop.permute.xlu1 %739  ;;  %v494_v16 = vmul.f32 %v493_v7, %v490_v5  ;;  %v525_v28 = vstv %s1982_s11  ;;  %v440_v37 = vstv %s1340_s25  ;;  %s1739_s11 = smov 110   ;;  %s2044_s25 = sld [smem:[#allocation4 + $0x1f]]  ;;  %v646_v7 = vrot.slane %v645_v60, 7 }
  0xd6   : > { %368 = vrot.lane.b32.xlu2 %v366_v33, %s1730_s20  ;;  %v526_v12 = vmul.f32 %v525_v28, %v522_v24  ;;  %vm647_vm7 = vcmask 261120  }
  0xdb   : > { %v1966_v61 = vld [vmem:[#allocation3] sm:$0x7] }
  0xdc   : > { %v363_v1 = vmul.f32 %v1966_v61, %v1931_v25  ;;  %v395_v6 = vmul.f32 %v1946_v35, %v1966_v61  ;;  %v550_v25 = vrot.slane %v549_v22, 7  ;;  %v427_v34 = vmul.f32 %v1950_v39, %v1966_v61 }
  0xdd   : > { %v772_v40 = vpop.permute.xlu1 %771  ;;  %v582_v39 = vrot.slane %v1900_v9, 7  ;;  %v459_v47 = vmul.f32 %v1960_v54, %v1966_v61 }
  0xde   : > { %v773_v41 = vrot.slane %v772_v40, 7  ;;  %400 = vrot.lane.b32.xlu2 %v398_v42, %s1731_s26  ;;  %v377_v8 = vmul.f32 %v376_v2, %v363_v1  ;;  %v409_v29 = vmul.f32 %v408_v19, %v395_v6  ;;  %v2004_v31 = vsel %vm551_vm2, %v550_v25, %v549_v22 }
  0xdf   : > { %v554_v38 = vmul.f32 %v2004_v31, %v1933_v26  ;;  %v441_v42 = vmul.f32 %v440_v37, %v427_v34  ;;  %v504_v1 = vstv %s2026_s10  ;;  %v2062_v6 = vsel %vm647_vm7, %v646_v7, %v645_v60  ;;  %s1743_s10 = smov 63  }
  0xe0   : > { %v1954_v44 = vsel %vm774_vm11, %v773_v41, %v772_v40  ;;  %v536_v22 = vstv %s2044_s25  ;;  %v650_v25 = vmul.f32 %v2062_v6, %v1933_v26  ;;  %v555_v34 = vmul.f32 %v2004_v31, %v1966_v61  ;;  %s1379_s25 = sld [smem:[#allocation4 + $0x17]] }
  0xe1   : > { %v777_v46 = vmul.f32 %v1954_v44, %v1933_v26  ;;  %vm742_vm11 = vcmask 285696   ;;  %vm403_vm2 = vcmask 1031168   ;;  %vm531_vm7 = vcmask 908288  }
  0xe3   : > { %v781_v50 = vmul.f32 %v780_v45, %v777_v46 }
  0xe5   : > { %v804_v52 = vpop.permute.xlu1 %803  ;;  %783 = vrot.lane.b32.xlu1 %v781_v50, %s1732_s28  ;;  %v472_v50 = vstv %s2009_s30  ;;  %s1376_s30 = sld [smem:[#allocation4 + $0x2e]] }
  0xe6   : > { %v805_v53 = vrot.slane %v804_v52, 7  ;;  %432 = vrot.lane.b32.xlu2 %v430_v51, %s1733_s29  ;;  %v2033_v51 = vsel %vm583_vm4, %v582_v39, %v1900_v9  ;;  %v1067_v39 = vstv %s1379_s25  ;;  %s1354_s25 = sld [smem:[#allocation4 + $0x23]]  ;;  %vm467_vm4 = vcmask 1014784  }
  0xe7   : > { %v587_v31 = vmul.f32 %v2033_v51, %v1966_v61 }
  0xe8   : > { %v807_v55 = vsel %vm806_vm13, %v805_v53, %v804_v52  ;;  %v586_v52 = vmul.f32 %v2033_v51, %v1933_v26  ;;  %vm838_vm13 = vcmask 400384  }
  0xe9   : > { %v809_v57 = vmul.f32 %v807_v55, %v1933_v26  ;;  %v810_v33 = vmul.f32 %v807_v55, %v1966_v61  ;;  %v473_v55 = vmul.f32 %v472_v50, %v459_v47 }
  0xeb   : > { %v813_v59 = vmul.f32 %v812_v56, %v809_v57  ;;  %v824_v41 = vmul.f32 %v823_v36, %v810_v33  ;;  %v614_v56 = vrot.slane %v1906_v14, 7 }
  0xed   : > { %v1969_v63 = vpop.permute.xlu1 %835  ;;  %815 = vrot.lane.b32.xlu0 %v813_v59, %s1734_s6  ;;  %v491_v59 = vmul.f32 %v1978_v3, %v1966_v61  ;;  %v2053_v2 = vsel %vm615_vm6, %v614_v56, %v1906_v14  ;;  %vm499_vm6 = vcmask 916480  }
  0xee   : > { %464 = vrot.lane.b32.xlu2 %v462_v0, %s1735_s8  ;;  %v972_v0 = vstv %s2030_s23  ;;  %v618_v3 = vmul.f32 %v2053_v2, %v1933_v26  ;;  %s1350_s23 = sld [smem:[#allocation4 + $0x21]] }
  0xf5   : > { %v868_v11 = vpop.permute.xlu1 %867  ;;  %379 = vrot.lane.b32.xlu0 %v377_v8, %s1730_s20  ;;  %s1347_s20 = sld [smem:[#allocation4 + $0x7]] }
  0xf6   : > { %v869_v15 = vrot.slane %v868_v11, 7  ;;  %496 = vrot.lane.b32.xlu2 %v494_v16, %s1736_s24 }
  0xf8   : > { %v1990_v17 = vsel %vm870_vm15, %v869_v15, %v868_v11  ;;  %v505_v11 = vmul.f32 %v504_v1, %v491_v59  ;;  %v837_v1 = vrot.slane %v1969_v63, 7  ;;  %vm1029_vm15 = vcmask 539648  }
  0xf9   : > { %v873_v21 = vmul.f32 %v1990_v17, %v1933_v26 }
  0xfb   : > { %v877_v27 = vmul.f32 %v876_v18, %v873_v21  ;;  %v557_v40 = vstv %s1347_s20  ;;  %s1741_s20 = smov 109   ;;  %v523_v18 = vmul.f32 %v1995_v20, %v1966_v61  ;;  %v1014_v21 = vstv %s1376_s30  ;;  %s1357_s30 = sld [smem:[#allocation4 + $0xc]] }
  0xfc   : > { %v558_v46 = vmul.f32 %v557_v40, %v554_v38 }
  0xfd   : > { %v900_v30 = vpop.permute.xlu1 %899  ;;  %879 = vrot.lane.b32.xlu1 %v877_v27, %s1737_s27  ;;  %411 = vrot.lane.b32.xlu0 %v409_v29, %s1731_s26  ;;  %s1349_s26 = sld [smem:[#allocation4 + $0x8]]  ;;  %v678_v27 = vrot.slane %v1904_v13, 7 }
  0xfe   : > { %v901_v35 = vrot.slane %v900_v30, 7  ;;  %528 = vrot.lane.b32.xlu2 %v526_v12, %s1738_s21 }
  0xff   : > { %v2080_v33 = vsel %vm679_vm9, %v678_v27, %v1904_v13  ;;  %vm595_vm9 = vcmask 891904  }
 0x100   : > { %v2015_v43 = vsel %vm902_vm3, %v901_v35, %v900_v30  ;;  %v537_v30 = vmul.f32 %v536_v22, %v523_v18  ;;  %v682_v36 = vmul.f32 %v2080_v33, %v1933_v26  ;;  %v778_v22 = vmul.f32 %v1954_v44, %v1966_v61 }
 0x101   : > { %v906_v48 = vmul.f32 %v2015_v43, %v1966_v61  ;;  %v716_v50 = vstv %s1357_s30  ;;  %s2268_s30 = smov 60   ;;  %vm435_vm3 = vcmask 1022976  }
 0x103   : > { %v589_v53 = vstv %s1349_s26  ;;  %v920_v54 = vmul.f32 %v919_v49, %v906_v48  ;;  %s1348_s26 = sld [smem:[#allocation4 + $0x20]]  ;;  %v713_v48 = vmul.f32 %v1929_v23, %v1933_v26  ;;  %v741_v49 = vrot.slane %v1938_v32, 7 }
 0x104   : > { %v590_v58 = vmul.f32 %v589_v53, %v586_v52 }
 0x105   : > { %v2018_v45 = vpop.permute.xlu1 %931  ;;  %826 = vrot.lane.b32.xlu1 %v824_v41, %s1734_s6  ;;  %443 = vrot.lane.b32.xlu0 %v441_v42, %s1733_s29  ;;  %s2037_s29 = sld [smem:[#allocation4 + $0x9]]  ;;  %s1740_s6 = smov 77   ;;  %v743_v56 = vsel %vm742_vm11, %v741_v49, %v1938_v32  ;;  %vm659_vm11 = vcmask 785408  }
 0x106   : > { %560 = vrot.lane.b32.xlu2 %v558_v46, %s1739_s11  ;;  %v600_v46 = vstv %s1350_s23  ;;  %s1747_s23 = smov 94  }
 0x107   : > { %v601_v52 = vmul.f32 %v600_v46, %v587_v31  ;;  %v905_v31 = vmul.f32 %v2015_v43, %v1933_v26 }
 0x109   : > { %v568_v35 = vstv %s1348_s26  ;;  %s1382_s26 = sld [smem:[#allocation4 + $0x31]] }
 0x10a   : > { %v569_v38 = vmul.f32 %v568_v35, %v555_v34 }
 0x10b   : > { %v621_v8 = vstv %s2037_s29  ;;  %s1744_s29 = smov 96  }
 0x10c   : > { %v622_v16 = vmul.f32 %v621_v8, %v618_v3  ;;  %v651_v8 = vmul.f32 %v2062_v6, %v1966_v61  ;;  %v683_v6 = vmul.f32 %v2080_v33, %v1966_v61 }
 0x10d   : > { %v964_v57 = vpop.permute.xlu1 %963  ;;  %922 = vrot.lane.b32.xlu1 %v920_v54, %s1740_s6  ;;  %475 = vrot.lane.b32.xlu0 %v473_v55, %s1735_s8  ;;  %s1353_s8 = sld [smem:[#allocation4 + $0xa]]  ;;  %v717_v55 = vmul.f32 %v716_v50, %v713_v48 }
 0x10e   : > { %v965_v9 = vrot.slane %v964_v57, 7  ;;  %592 = vrot.lane.b32.xlu2 %v590_v58, %s1741_s20 }
 0x10f   : > { %v1110_v58 = vstv %s1382_s26  ;;  %s1356_s26 = sld [smem:[#allocation4 + $0x24]] }
 0x110   : > { %v2047_v62 = vsel %vm966_vm5, %v965_v9, %v964_v57  ;;  %v619_v57 = vmul.f32 %v2053_v2, %v1966_v61 }
 0x111   : > { %v969_v5 = vmul.f32 %v2047_v62, %v1933_v26  ;;  %v970_v46 = vmul.f32 %v2047_v62, %v1966_v61 }
 0x113   : > { %v973_v10 = vmul.f32 %v972_v0, %v969_v5  ;;  %v653_v28 = vstv %s1353_s8  ;;  %s1745_s8 = smov 95   ;;  %v745_v0 = vmul.f32 %v743_v56, %v1933_v26 }
 0x114   : > { %v654_v12 = vmul.f32 %v653_v28, %v650_v25 }
 0x115   : > { %v995_v15 = vpop.permute.xlu1 %994  ;;  %975 = vrot.lane.b32.xlu1 %v973_v10, %s1724_s5  ;;  %507 = vrot.lane.b32.xlu0 %v505_v11, %s1736_s24  ;;  %s1355_s24 = sld [smem:[#allocation4 + $0xb]]  ;;  %v839_v10 = vsel %vm838_vm13, %v837_v1, %v1969_v63  ;;  %v664_v11 = vstv %s1354_s25  ;;  %v696_v63 = vstv %s1356_s26  ;;  %vm722_vm13 = vcmask 769024  }
 0x116   : > { %v996_v14 = vrot.slane %v995_v15, 7  ;;  %624 = vrot.lane.b32.xlu2 %v622_v16, %s1742_s7  ;;  %v665_v16 = vmul.f32 %v664_v11, %v651_v8  ;;  %v697_v27 = vmul.f32 %v696_v63, %v683_v6  ;;  %s1371_s25 = sld [smem:[#allocation4 + $0x13]]  ;;  %v842_v43 = vmul.f32 %v839_v10, %v1966_v61 }
 0x117   : > { %s1369_s26 = sld [smem:[#allocation4 + $0x12]] }
 0x118   : > { %v2066_v19 = vsel %vm997_vm8, %v996_v14, %v995_v15  ;;  %v841_v15 = vmul.f32 %v839_v10, %v1933_v26  ;;  %v338_v10 = vld [vmem:[#allocation8] ss:$8 sm:$0x3]  ;;  %vm563_vm8 = vcmask 900096  }
 0x119   : > { %v1001_v24 = vmul.f32 %v2066_v19, %v1966_v61 }
 0x11b   : > { %v1015_v29 = vmul.f32 %v1014_v21, %v1001_v24  ;;  %v685_v37 = vstv %s1355_s24  ;;  %s1746_s24 = smov 61   ;;  %v933_v24 = vrot.slane %v2018_v45, 7 }
 0x11c   : > { %v686_v41 = vmul.f32 %v685_v37, %v682_v36  ;;  %v940_v34 = vstv %s1371_s25  ;;  %v746_v37 = vmul.f32 %v743_v56, %v1966_v61  ;;  %s1378_s25 = sld [smem:[#allocation4 + $0x2f]] }
 0x11d   : > { %v2075_v20 = vpop.permute.xlu1 %1026  ;;  %1017 = vrot.lane.b32.xlu1 %v1015_v29, %s1743_s10  ;;  %539 = vrot.lane.b32.xlu0 %v537_v30, %s1738_s21  ;;  %s2090_s21 = sld [smem:[#allocation4 + $0x22]]  ;;  %v935_v29 = vsel %vm934_vm14, %v933_v24, %v2018_v45  ;;  %vm754_vm14 = vcmask 760832  }
 0x11e   : > { %656 = vrot.lane.b32.xlu2 %v654_v12, %s1744_s29  ;;  %v714_v12 = vmul.f32 %v1929_v23, %v1966_v61  ;;  %v937_v44 = vmul.f32 %v935_v29, %v1933_v26 }
 0x120   : > { %v941_v36 = vmul.f32 %v940_v34, %v937_v44 }
 0x123   : > { %v632_v59 = vstv %s2090_s21  ;;  %s1749_s21 = smov 93  }
 0x124   : > { %v633_v2 = vmul.f32 %v632_v59, %v619_v57 }
 0x125   : > { %v1059_v40 = vpop.permute.xlu1 %1058  ;;  %571 = vrot.lane.b32.xlu0 %v569_v38, %s1739_s11  ;;  %s1359_s11 = sld [smem:[#allocation4 + $0xd]]  ;;  %v874_v38 = vmul.f32 %v1990_v17, %v1966_v61 }
 0x126   : > { %v1060_v13 = vrot.slane %v1059_v40, 7  ;;  %688 = vrot.lane.b32.xlu2 %v686_v41, %s1745_s8 }
 0x128   : > { %v2092_v42 = vsel %vm1061_vm10, %v1060_v13, %v1059_v40  ;;  %vm627_vm10 = vcmask 883712  }
 0x129   : > { %v1064_v47 = vmul.f32 %v2092_v42, %v1933_v26 }
 0x12b   : > { %v1068_v51 = vmul.f32 %v1067_v39, %v1064_v47  ;;  %v748_v32 = vstv %s1359_s11  ;;  %s1362_s11 = sld [smem:[#allocation4 + $0x27]]  ;;  %v908_v39 = vstv %s1369_s26  ;;  %v1028_v47 = vrot.slane %v2075_v20, 7 }
 0x12c   : > { %v749_v7 = vmul.f32 %v748_v32, %v745_v0  ;;  %v909_v49 = vmul.f32 %v908_v39, %v905_v31 }
 0x12d   : > { %v1091_v53 = vpop.permute.xlu1 %1090  ;;  %1070 = vrot.lane.b32.xlu1 %v1068_v51, %s1746_s24  ;;  %603 = vrot.lane.b32.xlu0 %v601_v52, %s1741_s20  ;;  %s1365_s20 = sld [smem:[#allocation4 + $0x10]]  ;;  %v1030_v51 = vsel %vm1029_vm15, %v1028_v47, %v2075_v20  ;;  %vm786_vm15 = vcmask 752640  }
 0x12e   : > { %v1092_v54 = vrot.slane %v1091_v53, 7  ;;  %719 = vrot.lane.b32.xlu2 %v717_v55, %s1747_s23 }
 0x130   : > { %v2105_v9 = vsel %vm1093_vm12, %v1092_v54, %v1091_v53  ;;  %v2113_v5 = vpop.permute.xlu2 %368  ;;  %v1032_v53 = vmul.f32 %v1030_v51, %v1933_v26  ;;  %vm691_vm12 = vcmask 777216  }
 0x131   : > { %v1097_v60 = vmul.f32 %v2105_v9, %v1966_v61  ;;  %v791_v25 = vstv %s1362_s11  ;;  %s343_s11 = sld [smem:[#allocation4]] }
 0x132   : > { %v792_v28 = vmul.f32 %v791_v25, %v778_v22  ;;  %v1046_v22 = vstv %s1378_s25  ;;  %v370_v25 = vrot.slane %v2113_v5, 1  ;;  %s1612_s25 = scalar_lea.hbm %s2266_s3, 4 }
 0x133   : > { %v1111_v3 = vmul.f32 %v1110_v58, %v1097_v60  ;;  %v844_v14 = vstv %s1365_s20  ;;  %s1368_s20 = sld [smem:[#allocation4 + $0x2a]]  ;;  %v938_v58 = vmul.f32 %v935_v29, %v1966_v61  ;;  %v1065_v60 = vmul.f32 %v2092_v42, %v1966_v61  ;;  %v339_v42 = vld [vmem:[#allocation2] sm:$0x3] }
 0x134   : > { %v845_v21 = vmul.f32 %v844_v14, %v841_v15  ;;  %v341_v15 = vld [vmem:[#allocation3] sm:$0x3]  ;;  %v1033_v14 = vmul.f32 %v1030_v51, %v1966_v61  ;;  %v372_v61 = vsel %vm371_vm0, %v2113_v5, %v370_v25 }
 0x135   : > { %1113 = vrot.lane.b32.xlu1 %v1111_v3, %s2268_s30  ;;  %635 = vrot.lane.b32.xlu0 %v633_v2, %s1742_s7  ;;  %s1750_s7 = smov 79   ;;  %s1358_s30 = sld [smem:[#allocation4 + $0x25]]  ;;  %v1000_v3 = vmul.f32 %v2066_v19, %v1933_v26 }
 0x136   : > { %751 = vrot.lane.b32.xlu2 %v749_v7, %s1749_s21  ;;  %v1047_v29 = vmul.f32 %v1046_v22, %v1033_v14 }
 0x137   : > { %v344_v19 = vstv %s343_s11 }
 0x138   : > { %v2122_v18 = vpop.permute.xlu2 %400 }
 0x139   : > { %v887_v40 = vstv %s1368_s20 }
 0x13a   : > { %v888_v41 = vmul.f32 %v887_v40, %v874_v38 }
 0x13b   : > { %v727_v33 = vstv %s1358_s30  ;;  %s1377_s30 = sld [smem:[#allocation4 + $0x16]] }
 0x13c   : > { %v728_v35 = vmul.f32 %v727_v33, %v714_v12  ;;  %v1096_v33 = vmul.f32 %v2105_v9, %v1933_v26 }
 0x13d   : > { %667 = vrot.lane.b32.xlu0 %v665_v16, %s1744_s29  ;;  %s1360_s29 = sld [smem:[#allocation4 + $0x26]]  ;;  %v340_v16 = vmul.f32 %v339_v42, %v338_v10 }
 0x13e   : > { %847 = vrot.lane.b32.xlu2 %v845_v21, %s1750_s7  ;;  %v342_v21 = vmul.f32 %v341_v15, %v338_v10 }
 0x140   : > { %v2133_v30 = vpop.permute.xlu2 %432 }
 0x141   : > { %v1035_v54 = vstv %s1377_s30  ;;  %v434_v9 = vrot.slane %v2133_v30, 1 }
 0x142   : > { %v1036_v57 = vmul.f32 %v1035_v54, %v1032_v53 }
 0x143   : > { %v759_v45 = vstv %s1360_s29  ;;  %s1381_s29 = sld [smem:[#allocation4 + $0x18]] }
 0x144   : > { %v760_v13 = vmul.f32 %v759_v45, %v746_v37  ;;  %v402_v45 = vrot.slane %v2122_v18, 1 }
 0x145   : > { %699 = vrot.lane.b32.xlu0 %v697_v27, %s1745_s8  ;;  %s1751_s8 = smov 76   ;;  %v345_v27 = vmul.f32 %v344_v19, %v340_v16 }
 0x146   : > { %794 = vrot.lane.b32.xlu2 %v792_v28, %s1732_s28  ;;  %s1374_s28 = sld [smem:[#allocation4 + $0x2d]]  ;;  %v404_v5 = vsel %vm403_vm2, %v2122_v18, %v402_v45 }
 0x148   : > { %v2142_v23 = vpop.permute.xlu2 %464 }
 0x149   : > { %v466_v51 = vrot.slane %v2142_v23, 1 }
 0x14b   : > { %v468_v18 = vsel %vm467_vm4, %v2142_v23, %v466_v51 }
 0x14c   : > { %v982_v17 = vstv %s1374_s28 }
 0x14d   : > { %730 = vrot.lane.b32.xlu0 %v728_v35, %s1747_s23  ;;  %s1366_s23 = sld [smem:[#allocation4 + $0x29]]  ;;  %v983_v50 = vmul.f32 %v982_v17, %v970_v46  ;;  %v436_v17 = vsel %vm435_vm3, %v2133_v30, %v434_v9 }
 0x14e   : > { %943 = vrot.lane.b32.xlu2 %v941_v36, %s1751_s8  ;;  %v1099_v36 = vstv %s1381_s29 }
 0x150   : > { %v2153_v48 = vpop.permute.xlu2 %496 }
 0x153   : > { %v855_v62 = vstv %s1366_s23 }
 0x154   : > { %v856_v55 = vmul.f32 %v855_v62, %v842_v43 }
 0x155   : > { %762 = vrot.lane.b32.xlu0 %v760_v13, %s1749_s21  ;;  %s1380_s21 = sld [smem:[#allocation4 + $0x30]] }
 0x156   : > { %890 = vrot.lane.b32.xlu2 %v888_v41, %s1737_s27  ;;  %s1372_s27 = sld [smem:[#allocation4 + $0x2c]]  ;;  %v1100_v41 = vmul.f32 %v1099_v36, %v1096_v33 }
 0x158   : > { %v2162_v56 = vpop.permute.xlu2 %528 }
 0x15b   : > { %v1078_v0 = vstv %s1380_s21  ;;  %s1167_s21 = scalar_lea.sflag [#allocation6], %s1882_s14 }
 0x15c   : > { %v951_v20 = vstv %s1372_s27  ;;  %v1079_v32 = vmul.f32 %v1078_v0, %v1065_v60 }
 0x15d   : > { %911 = vrot.lane.b32.xlu0 %v909_v49, %s1740_s6  ;;  %s1752_s6 = smov 62   ;;  %v952_v1 = vmul.f32 %v951_v20, %v938_v58  ;;  %v498_v58 = vrot.slane %v2153_v48, 1 }
 0x15e   : > { %985 = vrot.lane.b32.xlu2 %v983_v50, %s1724_s5  ;;  %s1375_s5 = sld [smem:[#allocation4 + $0x15]] }
 0x15f   : > { %v2158_v52 = vpop.permute.xlu0 %815  ;;  %v500_v0 = vsel %vm499_vm6, %v2153_v48, %v498_v58 }
 0x160   : > { %v2172_v2 = vpop.permute.xlu2 %560 }
 0x161   : > { %v562_v15 = vrot.slane %v2172_v2, 1 }
 0x163   : > { %v564_v48 = vsel %vm563_vm8, %v2172_v2, %v562_v15 }
 0x164   : > { %v1003_v8 = vstv %s1375_s5 }
 0x165   : > { %858 = vrot.lane.b32.xlu0 %v856_v55, %s1750_s7  ;;  %s1334_s7 = sld [smem:[#allocation4 + $0x19]]  ;;  %v1004_v11 = vmul.f32 %v1003_v8, %v1000_v3  ;;  %v530_v3 = vrot.slane %v2162_v56, 1 }
 0x166   : > { %1038 = vrot.lane.b32.xlu2 %v1036_v57, %s1752_s6 }
 0x167   : > { %v380_v59 = vpop.permute.xlu0 %379  ;;  %v532_v23 = vsel %vm531_vm7, %v2162_v56, %v530_v3 }
 0x168   : > { %v2177_v24 = vpop.permute.xlu2 %592  ;;  %v381_v12 = vrot.slane %v380_v59, 1 }
 0x16a   : > { %v382_v35 = vsel %vm371_vm0, %v380_v59, %v381_v12  ;;  %vm818_vm0 = vcmask 654336  }
 0x16b   : > { %v348_v63 = vstv %s1334_s7 }
 0x16c   : > { %v349_v28 = vmul.f32 %v348_v63, %v342_v21  ;;  %v594_v63 = vrot.slane %v2177_v24, 1 }
 0x16d   : > { %954 = vrot.lane.b32.xlu0 %v952_v1, %s1751_s8  ;;  %s1384_s8 = sshll.u32 %s1799_s19, 1 }
 0x16e   : > { %1081 = vrot.lane.b32.xlu2 %v1079_v32, %s1746_s24  ;;  %v350_v44 = vadd.f32 %v349_v28, %v345_v27  ;;  %v596_v56 = vsel %vm595_vm9, %v2177_v24, %v594_v63  ;;  %s1333_s24 = sshll.u32 %s1882_s14, 1  ;;  %s1181_s23 = scalar_lea.hbm %s2266_s3, %s1384_s8 }
 0x16f   : > { %v412_v7 = vpop.permute.xlu0 %411  ;;  %s250_s20 = scalar_lea.vmem [#allocation11], %s1333_s24  ;;  %s1185_s27 = sshll.u32 %s1181_s23, 4  ;;  %s1186_s27 = int_to_ptr.hbm [resolvable:$true] %s1185_s27 }
 0x170   : > { %v374_v37 = vadd.f32 %v372_v61, %v350_v44  ;;  %v413_v38 = vrot.slane %v412_v7, 1  ;;  %v2185_v13 = vpop.permute.xlu2 %624  ;;  %s1183_s30 = sshll.u32 %s250_s20, 4  ;;  %s1184_s30 = int_to_ptr.vmem [resolvable:$true] %s1183_s30 }
 0x171   : > { %v626_v61 = vrot.slane %v2185_v13, 1 }
 0x172   : > { %v384_v40 = vadd.f32 %v382_v35, %v374_v37  ;;  %v414_v31 = vsel %vm403_vm2, %v412_v7, %v413_v38  ;;  %v784_v38 = vpop.permute.xlu1 %783  ;;  %vm850_vm2 = vcmask 646144  }
 0x173   : > { %v628_v2 = vsel %vm627_vm10, %v2185_v13, %v626_v61 }
 0x174   : > { %v406_v39 = vadd.f32 %v404_v5, %v384_v40 }
 0x175   : > { %1006 = vrot.lane.b32.xlu0 %v1004_v11, %s1743_s10  ;;  %s2278_s10 = smov 60  }
 0x176   : > { %v416_v47 = vadd.f32 %v414_v31, %v406_v39 }
 0x177   : > { %v444_v6 = vpop.permute.xlu0 %443 }
 0x178   : > { %v445_v46 = vrot.slane %v444_v6, 1  ;;  %v657_v50 = vpop.permute.xlu2 %656  ;;  %v438_v43 = vadd.f32 %v436_v17, %v416_v47 }
 0x179   : > { %v658_v37 = vrot.slane %v657_v50, 1 }
 0x17a   : > { %v446_v49 = vsel %vm435_vm3, %v444_v6, %v445_v46  ;;  %v880_v47 = vpop.permute.xlu1 %879  ;;  %vm882_vm3 = vcmask 637952  }
 0x17b   : > { %v448_v53 = vadd.f32 %v446_v49, %v438_v43  ;;  %v660_v24 = vsel %vm659_vm11, %v657_v50, %v658_v37 }
 0x17d   : > { %1049 = vrot.lane.b32.xlu0 %v1047_v29, %s1752_s6  ;;  %v470_v57 = vadd.f32 %v468_v18, %v448_v53  ;;  %s1606_s6 = sshra.s32 %s1186_s27, 4  ;;  %s1607_s6 = int_to_ptr.hbm [resolvable:$true] %s1606_s6 }
 0x17e   : > { %s1608_s5 = scalar_lea.hbm %s1607_s6, 2  ;;  %p1613_p9 = scmp.lt.s32.totalorder %s1607_s6, %s2266_s3 }
 0x17f   : > { %v476_v34 = vpop.permute.xlu0 %475  ;;  %p1609_p1 = scmp.ne.s32.totalorder %s1607_s6, %s1608_s5  ;;  %p1614_p10 = scmp.lt.s32.totalorder %s1612_s25, %s1608_s5 }
 0x180   : > { %v477_v62 = vrot.slane %v476_v34, 1  ;;  %v689_v60 = vpop.permute.xlu2 %688 }
 0x181   : > { %p1610_p4 = pnand %p1609_p1, %p1847_p5  ;;  %p1615_p2 = por %p1614_p10, %p1613_p9 }
 0x182   : > { %v478_v55 = vsel %vm467_vm4, %v476_v34, %v477_v62  ;;  %v827_v58 = vpop.permute.xlu1 %826  ;;  %vm914_vm4 = vcmask 629760  }
 0x183   : > { %v480_v20 = vadd.f32 %v478_v55, %v470_v57  ;;  %p1611_p8 = pneg %p1610_p4 }
 0x185   : > { %1102 = vrot.lane.b32.xlu0 %v1100_v41, %s2278_s10  ;;  %v502_v32 = vadd.f32 %v500_v0, %v480_v20  ;;  %p1616_p11 = pnand %p1615_p2, %p1611_p8 }
 0x187   : > { %v508_v26 = vpop.permute.xlu0 %507 }
 0x188   : > { %v509_v59 = vrot.slane %v508_v26, 1  ;;  %v720_v16 = vpop.permute.xlu2 %719 }
 0x189   : > { %v721_v43 = vrot.slane %v720_v16, 1 }
 0x18a   : > { %v510_v1 = vsel %vm499_vm6, %v508_v26, %v509_v59  ;;  %v690_v26 = vrot.slane %v689_v60, 1  ;;  %v923_v15 = vpop.permute.xlu1 %922  ;;  %vm946_vm6 = vcmask 621568  }
 0x18b   : > { %v512_v8 = vadd.f32 %v510_v1, %v502_v32  ;;  %v723_v18 = vsel %vm722_vm13, %v720_v16, %v721_v43  ;;  %v924_v37 = vrot.slane %v923_v15, 1 }
 0x18c   : > { %v692_v17 = vsel %vm691_vm12, %v689_v60, %v690_v26 }
 0x18d   : > { %v534_v11 = vadd.f32 %v532_v23, %v512_v8 }
 0x18f   : > { %v540_v54 = vpop.permute.xlu0 %539 }
 0x190   : > { %v541_v7 = vrot.slane %v540_v54, 1  ;;  %v752_v29 = vpop.permute.xlu2 %751 }
 0x191   : > { %v753_v57 = vrot.slane %v752_v29, 1 }
 0x192   : > { %v542_v10 = vsel %vm531_vm7, %v540_v54, %v541_v7  ;;  %vm1009_vm7 = vcmask 515072  }
 0x193   : > { %v544_v21 = vadd.f32 %v542_v10, %v534_v11  ;;  %v755_v0 = vsel %vm754_vm14, %v752_v29, %v753_v57  ;;  %v817_v10 = vrot.slane %v2158_v52, 1 }
 0x195   : > { %v566_v19 = vadd.f32 %v564_v48, %v544_v21  ;;  %v819_v21 = vsel %vm818_vm0, %v2158_v52, %v817_v10  ;;  %v828_v48 = vrot.slane %v827_v58, 1 }
 0x197   : > { %v572_v30 = vpop.permute.xlu0 %571  ;;  %v829_v63 = vsel %vm818_vm0, %v827_v58, %v828_v48 }
 0x198   : > { %v573_v14 = vrot.slane %v572_v30, 1  ;;  %v848_v41 = vpop.permute.xlu2 %847 }
 0x19a   : > { %v574_v6 = vsel %vm563_vm8, %v572_v30, %v573_v14  ;;  %v785_v30 = vrot.slane %v784_v38, 1  ;;  %vm1041_vm8 = vcmask 506880  }
 0x19b   : > { %v576_v25 = vadd.f32 %v574_v6, %v566_v19 }
 0x19c   : > { %v787_v23 = vsel %vm786_vm15, %v784_v38, %v785_v30 }
 0x19d   : > { %v598_v12 = vadd.f32 %v596_v56, %v576_v25  ;;  %v881_v56 = vrot.slane %v880_v47, 1 }
 0x19f   : > { %v604_v42 = vpop.permute.xlu0 %603 }
 0x1a0   : > { %v605_v22 = vrot.slane %v604_v42, 1  ;;  %v795_v51 = vpop.permute.xlu2 %794 }
 0x1a1   : > { %v796_v3 = vrot.slane %v795_v51, 1 }
 0x1a2   : > { %v606_v28 = vsel %vm595_vm9, %v604_v42, %v605_v22  ;;  %v849_v22 = vrot.slane %v848_v41, 1  ;;  %vm1073_vm9 = vcmask 498688  }
 0x1a3   : > { %v608_v44 = vadd.f32 %v606_v28, %v598_v12  ;;  %v797_v42 = vsel %vm786_vm15, %v795_v51, %v796_v3  ;;  %v976_v12 = vpop.permute.xlu1 %975 }
 0x1a4   : > { %v851_v28 = vsel %vm850_vm2, %v848_v41, %v849_v22 }
 0x1a5   : > { %v630_v36 = vadd.f32 %v628_v2, %v608_v44  ;;  %v883_v2 = vsel %vm882_vm3, %v880_v47, %v881_v56 }
 0x1a7   : > { %v636_v27 = vpop.permute.xlu0 %635 }
 0x1a8   : > { %v637_v33 = vrot.slane %v636_v27, 1  ;;  %v944_v60 = vpop.permute.xlu2 %943 }
 0x1aa   : > { %v638_v35 = vsel %vm627_vm10, %v636_v27, %v637_v33  ;;  %vm1119_vm10 = vcmp.lt.s32.totalorder %v307_v4, 256 }
 0x1ab   : > { %v640_v40 = vadd.f32 %v638_v35, %v630_v36  ;;  %v1018_v26 = vpop.permute.xlu1 %1017 }
 0x1ad   : > { %v662_v31 = vadd.f32 %v660_v24, %v640_v40  ;;  %v945_v24 = vrot.slane %v944_v60, 1 }
 0x1af   : > { %v668_v34 = vpop.permute.xlu0 %667 }
 0x1b0   : > { %v669_v45 = vrot.slane %v668_v34, 1  ;;  %v891_v19 = vpop.permute.xlu2 %890 }
 0x1b1   : > { %v892_v33 = vrot.slane %v891_v19, 1 }
 0x1b2   : > { %v670_v5 = vsel %vm659_vm11, %v668_v34, %v669_v45 }
 0x1b3   : > { %v672_v46 = vadd.f32 %v670_v5, %v662_v31  ;;  %v893_v45 = vsel %vm882_vm3, %v891_v19, %v892_v33  ;;  %v925_v31 = vsel %vm914_vm4, %v923_v15, %v924_v37  ;;  %v1071_v57 = vpop.permute.xlu1 %1070 }
 0x1b5   : > { %v694_v13 = vadd.f32 %v692_v17, %v672_v46  ;;  %v977_v46 = vrot.slane %v976_v12, 1  ;;  %v947_v17 = vsel %vm946_vm6, %v944_v60, %v945_v24 }
 0x1b7   : > { %v700_v39 = vpop.permute.xlu0 %699 }
 0x1b8   : > { %v701_v9 = vrot.slane %v700_v39, 1  ;;  %v986_v52 = vpop.permute.xlu2 %985 }
 0x1b9   : > { %v987_v47 = vrot.slane %v986_v52, 1 }
 0x1ba   : > { %v702_v49 = vsel %vm691_vm12, %v700_v39, %v701_v9 }
 0x1bb   : > { %v704_v62 = vadd.f32 %v702_v49, %v694_v13 }
 0x1bd   : > { %v725_v50 = vadd.f32 %v723_v18, %v704_v62 }
 0x1bf   : > { %v731_v53 = vpop.permute.xlu0 %730 }
 0x1c0   : > { %v732_v54 = vrot.slane %v731_v53, 1  ;;  %v1039_v43 = vpop.permute.xlu2 %1038 }
 0x1c2   : > { %v733_v55 = vsel %vm722_vm13, %v731_v53, %v732_v54  ;;  %v978_v53 = vsel %vm966_vm5, %v976_v12, %v977_v46 }
 0x1c3   : > { %v735_v59 = vadd.f32 %v733_v55, %v725_v50  ;;  %v1019_v55 = vrot.slane %v1018_v26, 1  ;;  %v988_v50 = vsel %vm966_vm5, %v986_v52, %v987_v47  ;;  %vm1105_vm5 = vcmask 490496  }
 0x1c5   : > { %v757_v32 = vadd.f32 %v755_v0, %v735_v59  ;;  %v1040_v59 = vrot.slane %v1039_v43, 1  ;;  %v1020_v0 = vsel %vm1009_vm7, %v1018_v26, %v1019_v55 }
 0x1c7   : > { %v763_v20 = vpop.permute.xlu0 %762  ;;  %v1042_v3 = vsel %vm1041_vm8, %v1039_v43, %v1040_v59 }
 0x1c8   : > { %v764_v1 = vrot.slane %v763_v20, 1 }
 0x1ca   : > { %v765_v7 = vsel %vm754_vm14, %v763_v20, %v764_v1 }
 0x1cb   : > { %v767_v8 = vadd.f32 %v765_v7, %v757_v32  ;;  %v1072_v32 = vrot.slane %v1071_v57, 1 }
 0x1cd   : > { %v789_v11 = vadd.f32 %v787_v23, %v767_v8  ;;  %v1082_v8 = vpop.permute.xlu2 %1081 }
 0x1ce   : > { %v1083_v15 = vrot.slane %v1082_v8, 1 }
 0x1cf   : > { %v799_v14 = vadd.f32 %v797_v42, %v789_v11  ;;  %v912_v16 = vpop.permute.xlu0 %911  ;;  %v1074_v42 = vsel %vm1073_vm9, %v1071_v57, %v1072_v32 }
 0x1d0   : > { %v913_v35 = vrot.slane %v912_v16, 1 }
 0x1d1   : > { %v821_v6 = vadd.f32 %v819_v21, %v799_v14  ;;  %v1114_v14 = vpop.permute.xlu1 %1113 }
 0x1d2   : > { %v915_v5 = vsel %vm914_vm4, %v912_v16, %v913_v35  ;;  %v1115_v48 = vrot.slane %v1114_v14, 1 }
 0x1d3   : > { %v831_v25 = vadd.f32 %v829_v63, %v821_v6  ;;  %v1084_v6 = vsel %vm1073_vm9, %v1082_v8, %v1083_v15 }
 0x1d5   : > { %v853_v61 = vadd.f32 %v851_v28, %v831_v25 }
 0x1d7   : > { %v859_v27 = vpop.permute.xlu0 %858 }
 0x1d8   : > { %v860_v29 = vrot.slane %v859_v27, 1 }
 0x1da   : > { %v861_v44 = vsel %vm850_vm2, %v859_v27, %v860_v29  ;;  %v1116_v27 = vsel %vm1105_vm5, %v1114_v14, %v1115_v48 }
 0x1db   : > { %v863_v34 = vadd.f32 %v861_v44, %v853_v61 }
 0x1dd   : > { %v885_v36 = vadd.f32 %v883_v2, %v863_v34 }
 0x1df   : > { %v895_v38 = vadd.f32 %v893_v45, %v885_v36  ;;  %v955_v40 = vpop.permute.xlu0 %954 }
 0x1e0   : > { %v956_v39 = vrot.slane %v955_v40, 1 }
 0x1e1   : > { %v917_v41 = vadd.f32 %v915_v5, %v895_v38 }
 0x1e2   : > { %v957_v13 = vsel %vm946_vm6, %v955_v40, %v956_v39 }
 0x1e3   : > { %v927_v9 = vadd.f32 %v925_v31, %v917_v41 }
 0x1e5   : > { %v949_v49 = vadd.f32 %v947_v17, %v927_v9 }
 0x1e7   : > { %v959_v51 = vadd.f32 %v957_v13, %v949_v49  ;;  %v1007_v62 = vpop.permute.xlu0 %1006 }
 0x1e8   : > { %v1008_v54 = vrot.slane %v1007_v62, 1 }
 0x1e9   : > { %v980_v18 = vadd.f32 %v978_v53, %v959_v51 }
 0x1ea   : > { %v1010_v20 = vsel %vm1009_vm7, %v1007_v62, %v1008_v54 }
 0x1eb   : > { %v990_v58 = vadd.f32 %v988_v50, %v980_v18 }
 0x1ed   : > { %v1012_v30 = vadd.f32 %v1010_v20, %v990_v58 }
 0x1ef   : > { %v1022_v1 = vadd.f32 %v1020_v0, %v1012_v30  ;;  %v1050_v60 = vpop.permute.xlu0 %1049 }
 0x1f0   : > { %v1051_v7 = vrot.slane %v1050_v60, 1 }
 0x1f1   : > { %v1044_v23 = vadd.f32 %v1042_v3, %v1022_v1 }
 0x1f2   : > { %v1052_v10 = vsel %vm1041_vm8, %v1050_v60, %v1051_v7 }
 0x1f3   : > { %v1054_v11 = vadd.f32 %v1052_v10, %v1044_v23 }
 0x1f5   : > { %v1076_v16 = vadd.f32 %v1074_v42, %v1054_v11 }
 0x1f7   : > { %v1103_v21 = vpop.permute.xlu0 %1102  ;;  %v1086_v63 = vadd.f32 %v1084_v6, %v1076_v16 }
 0x1f8   : > { %v1104_v19 = vrot.slane %v1103_v21, 1 }
 0x1fa   : > { %v1106_v22 = vsel %vm1105_vm5, %v1103_v21, %v1104_v19 }
 0x1fb   : > { %v1108_v25 = vadd.f32 %v1106_v22, %v1086_v63 }
 0x1fd   : > { %v1118_v56 = vadd.f32 %v1116_v27, %v1108_v25 }
 0x1ff   : > { %v1123_v28 = vperm.slane %v1118_v56, 0  ;;  %v1124_v29 = vperm.slane %v1118_v56, 1  ;;  %v1139_v12 = vmul.f32 %v1118_v56, %v1118_v56  ;;  %1121 = vst.msk [vmem:[%s250_s20] sm:$0x3] %vm1119_vm10, %v1118_v56 }
 0x201   : > { %v1127_v61 = vsel %vm316_vm1, %v1123_v28, 0.0  ;;  %v1128_v33 = vsel %vm316_vm1, %v1124_v29, 0.0  ;;  %v1141_v44 = vperm.slane %v1139_v12, 0  ;;  %v1142_v34 = vperm.slane %v1139_v12, 1 }
 0x202   : > { %v1129_v2 = vadd.f32 %v1128_v33, %v1127_v61 }
 0x203   : > { %v1145_v35 = vsel %vm316_vm1, %v1141_v44, 0.0  ;;  %v1146_v52 = vsel %vm316_vm1, %v1142_v34, 0.0 }
 0x204   : > { %1130 = vadd.xlane.f32.xlu2 %v1129_v2  ;;  %v1147_v36 = vadd.f32 %v1146_v52, %v1145_v35 }
 0x206   : > { %1148 = vadd.xlane.f32.xlu0 %v1147_v36 }
 0x207   : > { %1619 = shalt.err (!%p1616_p11)
}
 0x208   : > { %1402 = dma.vmem_to_hbm [thread:$0]  (%p1847_p5), %s1184_s30, 32, %s1186_s27, %s1167_s21   ;;  %v1158_v47 = vand.u32 127, %v307_v4 }
 0x209   : > { %s1194_s8 = scalar_lea.hbm %s2267_s4, %s1799_s19  ;;  %s256_s26 = scalar_lea.vmem [#allocation12], %s1882_s14 }
 0x20a   : > { %s1196_s28 = sshll.u32 %s256_s26, 4  ;;  %vm1160_vm1 = vcmp.eq.s32.totalorder %v1158_v47, 1  ;;  %s1198_s30 = sshll.u32 %s1194_s8, 4  ;;  %vm1159_vm11 = vcmp.eq.s32.totalorder %v1158_v47, 0  ;;  %s1197_s28 = int_to_ptr.vmem [resolvable:$true] %s1196_s28  ;;  %s1199_s30 = int_to_ptr.hbm [resolvable:$true] %s1198_s30 }
 0x20b   : > { %s1172_s21 = scalar_lea.sflag [#allocation13], %s1882_s14  ;;  %s1634_s6 = sshra.s32 %s1199_s30, 4  ;;  %s1635_s6 = int_to_ptr.hbm [resolvable:$true] %s1634_s6 }
 0x20c   : > { %s1636_s5 = scalar_lea.hbm %s1635_s6, 1  ;;  %s1640_s7 = scalar_lea.hbm %s2267_s4, 2 }
 0x20d   : > { %p1637_p12 = scmp.ne.s32.totalorder %s1635_s6, %s1636_s5  ;;  %p1641_p3 = scmp.lt.s32.totalorder %s1635_s6, %s2267_s4 }
 0x20e   : > { %p1642_p7 = scmp.lt.s32.totalorder %s1640_s7, %s1636_s5 }
 0x20f   : > { %p1638_p13 = pnand %p1637_p12, %p1847_p5 }
 0x210   : > { %p1643_p1 = por %p1642_p7, %p1641_p3 }
 0x211   : > { %p1639_p0 = pneg %p1638_p13 }
 0x213   : > { %p1644_p4 = pnand %p1643_p1, %p1639_p0 }
 0x277   : > { %v1131_v37 = vpop.xlane.xlu2 %1130 }
 0x278   : > { %v1132_v45 = vrot.slane %v1131_v37, 4 }
 0x279   : > { %v1149_v38 = vpop.xlane.xlu0 %1148 }
 0x27a   : > { %v1133_v40 = vadd.f32 %v1132_v45, %v1131_v37  ;;  %v1150_v24 = vrot.slane %v1149_v38, 4 }
 0x27c   : > { %v1134_v5 = vrot.slane %v1133_v40, 2  ;;  %v1151_v41 = vadd.f32 %v1150_v24, %v1149_v38 }
 0x27e   : > { %v1152_v31 = vrot.slane %v1151_v41, 2  ;;  %v1135_v39 = vadd.f32 %v1134_v5, %v1133_v40 }
 0x280   : > { %v1153_v26 = vadd.f32 %v1152_v31, %v1151_v41  ;;  %v1136_v9 = vrot.slane %v1135_v39, 1 }
 0x282   : > { %v1137_v46 = vadd.f32 %v1136_v9, %v1135_v39  ;;  %v1154_v17 = vrot.slane %v1153_v26, 1 }
 0x284   : > { %1388 = vpush %v1137_v46  ;;  %v1155_v49 = vadd.f32 %v1154_v17, %v1153_v26 }
 0x286   : > { %1390 = vpush %v1155_v49 }
 0x2b5   : > { %s1389_s23 = spop %1388 }
 0x2b6   : > { %v1163_v43 = vstv %s1389_s23 }
 0x2b7   : > { %s1391_s27 = spop %1390 }
 0x2b8   : > { %v1161_v13 = vstv %s1391_s27 }
 0x2b9   : > { %v1162_v51 = vsel %vm1160_vm1, %v1161_v13, 0.0 }
 0x2ba   : > { %v1164_v62 = vsel %vm1159_vm11, %v1163_v43, %v1162_v51 }
 0x2bb   : > { %1165 = vst [vmem:[%s256_s26] sm:$0x1] %v1164_v62 }
 0x2bc   : > { %1647 = shalt.err (!%p1644_p4)
}
 0x2bd   : > { %1403 = dma.vmem_to_hbm [thread:$0]  (%p1847_p5), %s1197_s28, 16, %s1199_s30, %s1172_s21  }
 0x2be PF: > { %s1210_s14 = sand.u32 1, %s1686_s15   ;;  %p2279_p8 = scmp.ge.s32.totalorder %s1698_s18, 2 }
 0x2bf   : > { %s1211_s10 = scalar_lea.sflag [#allocation6], %s1210_s14 }
 0x2c0   : > { %p1418_p9 = pnand %p2279_p8, %p1813_p6 }
 0x2c2   : > { %p1419_p10 = pneg %p1418_p9 }
 0x2c4   : > { %1677 = dma.done.wait (%p1419_p10), %s1211_s10, 32  }
 0x2c5   : > { %1679 = vsyncadd (%p1419_p10), %s1211_s10, 4294967264  ;;  %s1221_s24 = scalar_lea.sflag [#allocation13], %s1210_s14 }
 0x2c6   : > { %1681 = dma.done.wait (%p1419_p10), %s1221_s24, 16  }
 0x2c7   : > { %1683 = vsyncadd (%p1419_p10), %s1221_s24, 4294967280  ;;  %p23_p5 = scmp.ge.s32.totalorder %s1834_s9, 4   ;;  %s2280_s15 = smov %s1690_s16 }
 0x2c8   : > { %s2281_s16 = smov %s1694_s17  ;;  %s2282_s17 = smov %s1843_s12 }
 0x2c9   : > { %s2283_s18 = smov %s1834_s9  ;;  %25 = sbr.rel (!%p23_p5) target bundleno = 9 (0x9), region = 128 }
 0x2ce   :  { %1226 = vsyncpa [#allocation5], 1 }
 0x2cf   :  { %1228 = vsyncpa [#allocation5 + $0x1], 1 }
 0x2d0   :  { %1229 = vsyncpa [#allocation10], 1 }
 0x2d1   :  { %1231 = vsyncpa [#allocation10 + $0x1], 1 }
 0x2d2   :  { %1232 = vsyncpa [#allocation6], 1 }
 0x2d3   :  { %1234 = vsyncpa [#allocation6 + $0x1], 1 }
 0x2d4   :  { %1235 = vsyncpa [#allocation13], 1 }
 0x2d5   :  { %1237 = vsyncpa [#allocation13 + $0x1], 1 }
 0x2d6   :  { %1238 = vsyncpa [#allocation7], 1 }
 0x2d7   :  { %1240 = vsyncpa [#allocation7 + $0x1], 1 }

</bundles_post_ra>
